<compile_context>
chip_gen: v7x
topology: tpu7x:2x2x1
jax: 0.10.0
libtpu: 0.0.40
codegen_flags: <defaults>
</compile_context>

<pallas_src>
import jax
import jax.numpy as jnp
from jax.experimental import pallas as pl
from jax.experimental.pallas import tpu as pltpu

# ---------------------------------------------------------------------------
# Dimensions implied by the module
# ---------------------------------------------------------------------------
STATE_DIM = 68                     # chosen so concat(state, action) == 19 * dim(V) = 76
ACTION_DIM = 8
REP_IN = STATE_DIM + ACTION_DIM    # 76
EMLP_CH = 384                      # emlp default channel width
EMLP_OUT = 4                       # 4 * V**0
H2 = 128                           # layer2 hidden
OUT = 1


# ---------------------------------------------------------------------------
# Pallas kernel: fused MLP (EMLP surrogate + layer2, w4/w5 fused offline)
# ---------------------------------------------------------------------------
def _ecritic_kernel(s_ref, a_ref,
                    w1s, w1a, b1, w2, b2, w3, b3,
                    w45, b45, w6, b6, w7, b7,
                    o_ref):
    f32, bf16 = jnp.float32, jnp.bfloat16

    # layer1 hidden (EMLP surrogate), first matmul split over state/action so no
    # concat / lane padding is needed.  bf16 x bf16 -> f32 accumulate (native MXU path).
    h = jnp.dot(s_ref[...].astype(bf16), w1s[...], preferred_element_type=f32)
    h = h + jnp.dot(a_ref[...].astype(bf16), w1a[...], preferred_element_type=f32)
    h = jnp.maximum(h + b1[...], 0.0)
    h = jnp.maximum(jnp.dot(h.astype(bf16), w2[...], preferred_element_type=f32) + b2[...], 0.0)
    h = jnp.maximum(jnp.dot(h.astype(bf16), w3[...], preferred_element_type=f32) + b3[...], 0.0)
    # fused (384 -> 4 linear head) o (4 -> 128 linear) + ReLU  ==  384 -> 128 + ReLU
    h = jnp.maximum(jnp.dot(h.astype(bf16), w45[...], preferred_element_type=f32) + b45[...], 0.0)
    h = jnp.maximum(jnp.dot(h.astype(bf16), w6[...], preferred_element_type=f32) + b6[...], 0.0)
    # 128 -> 1 head, emitted lane-dense along batch:
    #   (1,128) @ (BM,128)^T -> (1,BM); h.T is an aligned f32 (BM,128)->(128,BM) transpose.
    y = jnp.dot(w7[...], h.T, preferred_element_type=f32)          # (1, BM)
    o_ref[...] = y + b7[...]


# ---------------------------------------------------------------------------
# Parameters (PyTorch-style init) and one-time preparation off the hot path
# ---------------------------------------------------------------------------
def init_params(key):
    """Deterministic PyTorch-style (uniform +-1/sqrt(fan_in)) initialization."""
    dims = [(REP_IN, EMLP_CH), (EMLP_CH, EMLP_CH), (EMLP_CH, EMLP_CH), (EMLP_CH, EMLP_OUT),
            (EMLP_OUT, H2), (H2, H2), (H2, OUT)]
    params = []
    for fin, fout in dims:
        kw, kb, key = jax.random.split(key, 3)
        bound = 1.0 / (fin ** 0.5)
        w = jax.random.uniform(kw, (fin, fout), jnp.float32, -bound, bound)
        b = jax.random.uniform(kb, (fout,), jnp.float32, -bound, bound)
        params.append((w, b))
    return params


def prepare_params(params):
    """One-time prep: fuse w4@w5, split w1 into state/action parts, cast weights to bf16."""
    (w1, b1), (w2, b2), (w3, b3), (w4, b4), (w5, b5), (w6, b6), (w7, b7) = params

    # Fuse linear 384->4 and 4->128 (no nonlinearity between): exact in real arithmetic.
    w45 = w4 @ w5                        # (384, 128)
    b45 = b4 @ w5 + b5                   # (128,)

    bf16 = jnp.bfloat16

    def Bv(b):                           # biases stay f32, shaped (1, N) for sublane broadcast
        return b.reshape(1, -1).astype(jnp.float32)

    return (
        w1[:STATE_DIM].astype(bf16),     # (68, 384)  state part of layer-1 weight
        w1[STATE_DIM:].astype(bf16),     # (8, 384)   action part of layer-1 weight
        Bv(b1),
        w2.astype(bf16), Bv(b2),
        w3.astype(bf16), Bv(b3),
        w45.astype(bf16), Bv(b45),
        w6.astype(bf16), Bv(b6),
        w7.T.astype(jnp.float32),        # (1, 128) final head row, kept f32 (tiny)
        b7.reshape(1, 1).astype(jnp.float32),
    )


# ---------------------------------------------------------------------------
# Forward pass
# ---------------------------------------------------------------------------
def _choose_bm(B):
    # Largest tile in {512, 256, 128} that still yields >= 2 grid steps
    # (amortizes per-step overhead; >=2 steps lets v7x use both TensorCores).
    for bm in (512, 256, 128):
        if pl.cdiv(B, bm) >= 2:
            return bm
    return 128


def ecritic_forward(state, action, prepared):
    assert state.shape[1] == STATE_DIM and action.shape[1] == ACTION_DIM
    B = state.shape[0]
    BM = _choose_bm(B)
    grid_b = pl.cdiv(B, BM)
    B_pad = grid_b * BM

    in_specs = [
        pl.BlockSpec((BM, STATE_DIM), lambda i: (i, 0)),
        pl.BlockSpec((BM, ACTION_DIM), lambda i: (i, 0)),
    ]
    # Weights / biases: full-array blocks with constant index maps -> resident in VMEM
    # across all grid steps (no re-DMA).
    for p in prepared:
        in_specs.append(pl.BlockSpec(p.shape, lambda i: (0, 0)))

    flops = 2 * B_pad * (STATE_DIM * EMLP_CH + ACTION_DIM * EMLP_CH
                         + 2 * EMLP_CH * EMLP_CH + EMLP_CH * H2 + H2 * H2 + H2)
    bytes_accessed = (sum(int(p.size) * p.dtype.itemsize for p in prepared)
                      + int(state.size) * state.dtype.itemsize
                      + int(action.size) * action.dtype.itemsize
                      + B_pad * 4)

    out = pl.pallas_call(
        _ecritic_kernel,
        out_shape=jax.ShapeDtypeStruct((1, B_pad), jnp.float32),   # lane-dense output
        grid=(grid_b,),
        in_specs=in_specs,
        out_specs=pl.BlockSpec((1, BM), lambda i: (0, i)),
        compiler_params=pltpu.CompilerParams(
            dimension_semantics=("parallel",)),
        cost_estimate=pl.CostEstimate(flops=flops, transcendentals=0,
                                      bytes_accessed=bytes_accessed),
    )(state, action, *prepared)

    return out[0, :B].reshape(B, 1)                                 # (B, 1)


# ---------------------------------------------------------------------------
# References
# ---------------------------------------------------------------------------
def ecritic_reference_f32(state, action, params):
    """Original unfused f32 model (concat -> EMLP surrogate -> layer2)."""
    hi = jax.lax.Precision.HIGHEST
    x = jnp.concatenate([state, action], axis=1).astype(jnp.float32)   # BatchStateActionMap surrogate
    (w1, b1), (w2, b2), (w3, b3), (w4, b4), (w5, b5), (w6, b6), (w7, b7) = params
    h = jnp.maximum(jnp.dot(x, w1, precision=hi) + b1, 0.0)
    h = jnp.maximum(jnp.dot(h, w2, precision=hi) + b2, 0.0)
    h = jnp.maximum(jnp.dot(h, w3, precision=hi) + b3, 0.0)
    h = jnp.dot(h, w4, precision=hi) + b4                        # EMLP linear head (no ReLU)
    h = jnp.maximum(jnp.dot(h, w5, precision=hi) + b5, 0.0)      # layer2: Linear(4,128)+ReLU
    h = jnp.maximum(jnp.dot(h, w6, precision=hi) + b6, 0.0)
    return jnp.dot(h, w7, precision=hi) + b7                     # (B, 1)


def ecritic_reference_prepared(state, action, prepared):
    """bf16-matched reference using the same prepared weights (validates the kernel itself)."""
    (w1s, w1a, b1, w2, b2, w3, b3, w45, b45, w6, b6, w7r, b7) = prepared
    f32, bf16 = jnp.float32, jnp.bfloat16
    h = (jnp.dot(state.astype(bf16), w1s, preferred_element_type=f32)
         + jnp.dot(action.astype(bf16), w1a, preferred_element_type=f32))
    h = jnp.maximum(h + b1, 0.0)
    for w, b in ((w2, b2), (w3, b3), (w45, b45), (w6, b6)):
        h = jnp.maximum(jnp.dot(h.astype(bf16), w, preferred_element_type=f32) + b, 0.0)
    return jnp.dot(h, w7r.T, preferred_element_type=f32) + b7    # (B, 1)


if __name__ == "__main__":
    key = jax.random.PRNGKey(0)
    kp, ks, ka = jax.random.split(key, 3)

    params = init_params(kp)
    prepared = prepare_params(params)        # one-time: fuse + split + bf16 cast

    fwd = jax.jit(ecritic_forward)

    # Small-batch case (single grid step).
    B = 2
    state = jax.random.normal(ks, (B, STATE_DIM), jnp.float32)
    action = jax.random.normal(ka, (B, ACTION_DIM), jnp.float32)
    out = jax.block_until_ready(fwd(state, action, prepared))
    assert out.shape == (B, 1), out.shape

    ref_match = ecritic_reference_prepared(state, action, prepared)
    ref_f32 = ecritic_reference_f32(state, action, params)
    assert jnp.allclose(out, ref_match, atol=2e-3, rtol=2e-3), (out, ref_match)
    assert jnp.allclose(out, ref_f32, atol=3e-2, rtol=3e-2), (out, ref_f32)

    # Multi-step grid with a ragged final block (exercises the >=2-step / v7x path).
    B2 = 130
    ks2, ka2 = jax.random.split(jax.random.PRNGKey(1))
    state2 = jax.random.normal(ks2, (B2, STATE_DIM), jnp.float32)
    action2 = jax.random.normal(ka2, (B2, ACTION_DIM), jnp.float32)
    out2 = jax.block_until_ready(fwd(state2, action2, prepared))
    ref2 = ecritic_reference_f32(state2, action2, params)
    assert out2.shape == (B2, 1), out2.shape
    assert jnp.allclose(out2, ref2, atol=3e-2, rtol=3e-2)

    print("KERNEL_OK")
</pallas_src>

<mosaic_0001>
module attributes {stable_mosaic.version = 11 : i64} {
  func.func @_ecritic_kernel(%arg0: i32, %arg1: memref<128x68xf32, #tpu.memory_space<vmem>>, %arg2: memref<128x8xf32, #tpu.memory_space<vmem>>, %arg3: memref<68x384xbf16, #tpu.memory_space<vmem>>, %arg4: memref<8x384xbf16, #tpu.memory_space<vmem>>, %arg5: memref<1x384xf32, #tpu.memory_space<vmem>>, %arg6: memref<384x384xbf16, #tpu.memory_space<vmem>>, %arg7: memref<1x384xf32, #tpu.memory_space<vmem>>, %arg8: memref<384x384xbf16, #tpu.memory_space<vmem>>, %arg9: memref<1x384xf32, #tpu.memory_space<vmem>>, %arg10: memref<384x128xbf16, #tpu.memory_space<vmem>>, %arg11: memref<1x128xf32, #tpu.memory_space<vmem>>, %arg12: memref<128x128xbf16, #tpu.memory_space<vmem>>, %arg13: memref<1x128xf32, #tpu.memory_space<vmem>>, %arg14: memref<1x128xf32, #tpu.memory_space<vmem>>, %arg15: memref<1x1xf32, #tpu.memory_space<vmem>>, %arg16: memref<1x128xf32, #tpu.memory_space<vmem>>) attributes {dimension_semantics = [#tpu.dimension_semantics<parallel>], iteration_bounds = array<i64: 1>, scalar_prefetch = 0 : i64, scratch_operands = 0 : i64, tpu.core_type = #tpu.core_type<tc>, window_params = [{transform_indices = @transform_0, window_bounds = array<i64: 128, 68>}, {transform_indices = @transform_1, window_bounds = array<i64: 128, 8>}, {pipeline_mode = #tpu.pipeline_mode<synchronous>, transform_indices = @transform_2, window_bounds = array<i64: 68, 384>}, {pipeline_mode = #tpu.pipeline_mode<synchronous>, transform_indices = @transform_3, window_bounds = array<i64: 8, 384>}, {pipeline_mode = #tpu.pipeline_mode<synchronous>, transform_indices = @transform_4, window_bounds = array<i64: 1, 384>}, {pipeline_mode = #tpu.pipeline_mode<synchronous>, transform_indices = @transform_5, window_bounds = array<i64: 384, 384>}, {pipeline_mode = #tpu.pipeline_mode<synchronous>, transform_indices = @transform_6, window_bounds = array<i64: 1, 384>}, {pipeline_mode = #tpu.pipeline_mode<synchronous>, transform_indices = @transform_7, window_bounds = array<i64: 384, 384>}, {pipeline_mode = #tpu.pipeline_mode<synchronous>, transform_indices = @transform_8, window_bounds = array<i64: 1, 384>}, {pipeline_mode = #tpu.pipeline_mode<synchronous>, transform_indices = @transform_9, window_bounds = array<i64: 384, 128>}, {pipeline_mode = #tpu.pipeline_mode<synchronous>, transform_indices = @transform_10, window_bounds = array<i64: 1, 128>}, {pipeline_mode = #tpu.pipeline_mode<synchronous>, transform_indices = @transform_11, window_bounds = array<i64: 128, 128>}, {pipeline_mode = #tpu.pipeline_mode<synchronous>, transform_indices = @transform_12, window_bounds = array<i64: 1, 128>}, {pipeline_mode = #tpu.pipeline_mode<synchronous>, transform_indices = @transform_13, window_bounds = array<i64: 1, 128>}, {pipeline_mode = #tpu.pipeline_mode<synchronous>, transform_indices = @transform_14, window_bounds = array<i64: 1, 1>}, {transform_indices = @transform_15, window_bounds = array<i64: 1, 128>}]} {
    %c0 = arith.constant 0 : index
    %c0_0 = arith.constant 0 : index
    %0 = vector.load %arg1[%c0, %c0_0] : memref<128x68xf32, #tpu.memory_space<vmem>>, vector<128x68xf32>
    %1 = arith.truncf %0 : vector<128x68xf32> to vector<128x68xbf16>
    %c0_1 = arith.constant 0 : index
    %c0_2 = arith.constant 0 : index
    %2 = vector.load %arg3[%c0_1, %c0_2] : memref<68x384xbf16, #tpu.memory_space<vmem>>, vector<68x384xbf16>
    %cst = arith.constant dense<0.000000e+00> : vector<128x384xf32>
    %3 = tpu.matmul %1, %2, %cst {dimension_numbers = #tpu.dot_dimension_numbers<[1], [0], [0], [1], [0, 0, 1, 1], [], []>} : vector<128x68xbf16>, vector<68x384xbf16>, vector<128x384xf32> -> vector<128x384xf32>
    %c0_3 = arith.constant 0 : index
    %c0_4 = arith.constant 0 : index
    %4 = vector.load %arg2[%c0_3, %c0_4] : memref<128x8xf32, #tpu.memory_space<vmem>>, vector<128x8xf32>
    %5 = arith.truncf %4 : vector<128x8xf32> to vector<128x8xbf16>
    %c0_5 = arith.constant 0 : index
    %c0_6 = arith.constant 0 : index
    %6 = vector.load %arg4[%c0_5, %c0_6] : memref<8x384xbf16, #tpu.memory_space<vmem>>, vector<8x384xbf16>
    %cst_7 = arith.constant dense<0.000000e+00> : vector<128x384xf32>
    %7 = tpu.matmul %5, %6, %cst_7 {dimension_numbers = #tpu.dot_dimension_numbers<[1], [0], [0], [1], [0, 0, 1, 1], [], []>} : vector<128x8xbf16>, vector<8x384xbf16>, vector<128x384xf32> -> vector<128x384xf32>
    %8 = arith.addf %3, %7 : vector<128x384xf32>
    %c0_8 = arith.constant 0 : index
    %c0_9 = arith.constant 0 : index
    %9 = vector.load %arg5[%c0_8, %c0_9] : memref<1x384xf32, #tpu.memory_space<vmem>>, vector<1x384xf32>
    %10 = vector.broadcast %9 : vector<1x384xf32> to vector<128x384xf32>
    %11 = arith.addf %8, %10 : vector<128x384xf32>
    %cst_10 = arith.constant 0.000000e+00 : f32
    %12 = vector.broadcast %cst_10 : f32 to vector<128x384xf32>
    %13 = arith.maximumf %11, %12 : vector<128x384xf32>
    %14 = arith.truncf %13 : vector<128x384xf32> to vector<128x384xbf16>
    %c0_11 = arith.constant 0 : index
    %c0_12 = arith.constant 0 : index
    %15 = vector.load %arg6[%c0_11, %c0_12] : memref<384x384xbf16, #tpu.memory_space<vmem>>, vector<384x384xbf16>
    %cst_13 = arith.constant dense<0.000000e+00> : vector<128x384xf32>
    %16 = tpu.matmul %14, %15, %cst_13 {dimension_numbers = #tpu.dot_dimension_numbers<[1], [0], [0], [1], [0, 0, 1, 1], [], []>} : vector<128x384xbf16>, vector<384x384xbf16>, vector<128x384xf32> -> vector<128x384xf32>
    %c0_14 = arith.constant 0 : index
    %c0_15 = arith.constant 0 : index
    %17 = vector.load %arg7[%c0_14, %c0_15] : memref<1x384xf32, #tpu.memory_space<vmem>>, vector<1x384xf32>
    %18 = vector.broadcast %17 : vector<1x384xf32> to vector<128x384xf32>
    %19 = arith.addf %16, %18 : vector<128x384xf32>
    %cst_16 = arith.constant 0.000000e+00 : f32
    %20 = vector.broadcast %cst_16 : f32 to vector<128x384xf32>
    %21 = arith.maximumf %19, %20 : vector<128x384xf32>
    %22 = arith.truncf %21 : vector<128x384xf32> to vector<128x384xbf16>
    %c0_17 = arith.constant 0 : index
    %c0_18 = arith.constant 0 : index
    %23 = vector.load %arg8[%c0_17, %c0_18] : memref<384x384xbf16, #tpu.memory_space<vmem>>, vector<384x384xbf16>
    %cst_19 = arith.constant dense<0.000000e+00> : vector<128x384xf32>
    %24 = tpu.matmul %22, %23, %cst_19 {dimension_numbers = #tpu.dot_dimension_numbers<[1], [0], [0], [1], [0, 0, 1, 1], [], []>} : vector<128x384xbf16>, vector<384x384xbf16>, vector<128x384xf32> -> vector<128x384xf32>
    %c0_20 = arith.constant 0 : index
    %c0_21 = arith.constant 0 : index
    %25 = vector.load %arg9[%c0_20, %c0_21] : memref<1x384xf32, #tpu.memory_space<vmem>>, vector<1x384xf32>
    %26 = vector.broadcast %25 : vector<1x384xf32> to vector<128x384xf32>
    %27 = arith.addf %24, %26 : vector<128x384xf32>
    %cst_22 = arith.constant 0.000000e+00 : f32
    %28 = vector.broadcast %cst_22 : f32 to vector<128x384xf32>
    %29 = arith.maximumf %27, %28 : vector<128x384xf32>
    %30 = arith.truncf %29 : vector<128x384xf32> to vector<128x384xbf16>
    %c0_23 = arith.constant 0 : index
    %c0_24 = arith.constant 0 : index
    %31 = vector.load %arg10[%c0_23, %c0_24] : memref<384x128xbf16, #tpu.memory_space<vmem>>, vector<384x128xbf16>
    %cst_25 = arith.constant dense<0.000000e+00> : vector<128x128xf32>
    %32 = tpu.matmul %30, %31, %cst_25 {dimension_numbers = #tpu.dot_dimension_numbers<[1], [0], [0], [1], [0, 0, 1, 1], [], []>} : vector<128x384xbf16>, vector<384x128xbf16>, vector<128x128xf32> -> vector<128x128xf32>
    %c0_26 = arith.constant 0 : index
    %c0_27 = arith.constant 0 : index
    %33 = vector.load %arg11[%c0_26, %c0_27] : memref<1x128xf32, #tpu.memory_space<vmem>>, vector<1x128xf32>
    %34 = vector.broadcast %33 : vector<1x128xf32> to vector<128x128xf32>
    %35 = arith.addf %32, %34 : vector<128x128xf32>
    %cst_28 = arith.constant 0.000000e+00 : f32
    %36 = vector.broadcast %cst_28 : f32 to vector<128x128xf32>
    %37 = arith.maximumf %35, %36 : vector<128x128xf32>
    %38 = arith.truncf %37 : vector<128x128xf32> to vector<128x128xbf16>
    %c0_29 = arith.constant 0 : index
    %c0_30 = arith.constant 0 : index
    %39 = vector.load %arg12[%c0_29, %c0_30] : memref<128x128xbf16, #tpu.memory_space<vmem>>, vector<128x128xbf16>
    %cst_31 = arith.constant dense<0.000000e+00> : vector<128x128xf32>
    %40 = tpu.matmul %38, %39, %cst_31 {dimension_numbers = #tpu.dot_dimension_numbers<[1], [0], [0], [1], [0, 0, 1, 1], [], []>} : vector<128x128xbf16>, vector<128x128xbf16>, vector<128x128xf32> -> vector<128x128xf32>
    %c0_32 = arith.constant 0 : index
    %c0_33 = arith.constant 0 : index
    %41 = vector.load %arg13[%c0_32, %c0_33] : memref<1x128xf32, #tpu.memory_space<vmem>>, vector<1x128xf32>
    %42 = vector.broadcast %41 : vector<1x128xf32> to vector<128x128xf32>
    %43 = arith.addf %40, %42 : vector<128x128xf32>
    %cst_34 = arith.constant 0.000000e+00 : f32
    %44 = vector.broadcast %cst_34 : f32 to vector<128x128xf32>
    %45 = arith.maximumf %43, %44 : vector<128x128xf32>
    %c0_35 = arith.constant 0 : index
    %c0_36 = arith.constant 0 : index
    %46 = vector.load %arg14[%c0_35, %c0_36] : memref<1x128xf32, #tpu.memory_space<vmem>>, vector<1x128xf32>
    %47 = tpu.transpose %45, [1, 0] : vector<128x128xf32> -> vector<128x128xf32>
    %cst_37 = arith.constant dense<0.000000e+00> : vector<1x128xf32>
    %48 = tpu.matmul %46, %47, %cst_37 {dimension_numbers = #tpu.dot_dimension_numbers<[1], [0], [0], [1], [0, 0, 1, 1], [], []>} : vector<1x128xf32>, vector<128x128xf32>, vector<1x128xf32> -> vector<1x128xf32>
    %c0_38 = arith.constant 0 : index
    %c0_39 = arith.constant 0 : index
    %49 = vector.load %arg15[%c0_38, %c0_39] : memref<1x1xf32, #tpu.memory_space<vmem>>, vector<1x1xf32>
    %50 = vector.broadcast %49 : vector<1x1xf32> to vector<1x128xf32>
    %51 = arith.addf %48, %50 : vector<1x128xf32>
    %c0_40 = arith.constant 0 : index
    %c0_41 = arith.constant 0 : index
    %52 = vector.load %arg16[%c0_40, %c0_41] : memref<1x128xf32, #tpu.memory_space<vmem>>, vector<1x128xf32>
    tpu.vector_store %arg16[%c0_40, %c0_41], %51 {strides = array<i32>} : memref<1x128xf32, #tpu.memory_space<vmem>>, vector<1x128xf32>,
    return
  }
  func.func @transform_0(%arg0: i32) -> (i32, i32) {
    %c0_i32 = arith.constant 0 : i32
    %c0_i32_0 = arith.constant 0 : i32
    return %arg0, %c0_i32 : i32, i32
  }
  func.func @transform_1(%arg0: i32) -> (i32, i32) {
    %c0_i32 = arith.constant 0 : i32
    %c0_i32_0 = arith.constant 0 : i32
    return %arg0, %c0_i32 : i32, i32
  }
  func.func @transform_2(%arg0: i32) -> (i32, i32) {
    %c0_i32 = arith.constant 0 : i32
    %c0_i32_0 = arith.constant 0 : i32
    %c0_i32_1 = arith.constant 0 : i32
    return %c0_i32, %c0_i32_0 : i32, i32
  }
  func.func @transform_3(%arg0: i32) -> (i32, i32) {
    %c0_i32 = arith.constant 0 : i32
    %c0_i32_0 = arith.constant 0 : i32
    %c0_i32_1 = arith.constant 0 : i32
    return %c0_i32, %c0_i32_0 : i32, i32
  }
  func.func @transform_4(%arg0: i32) -> (i32, i32) {
    %c0_i32 = arith.constant 0 : i32
    %c0_i32_0 = arith.constant 0 : i32
    %c0_i32_1 = arith.constant 0 : i32
    return %c0_i32, %c0_i32_0 : i32, i32
  }
  func.func @transform_5(%arg0: i32) -> (i32, i32) {
    %c0_i32 = arith.constant 0 : i32
    %c0_i32_0 = arith.constant 0 : i32
    %c0_i32_1 = arith.constant 0 : i32
    return %c0_i32, %c0_i32_0 : i32, i32
  }
  func.func @transform_6(%arg0: i32) -> (i32, i32) {
    %c0_i32 = arith.constant 0 : i32
    %c0_i32_0 = arith.constant 0 : i32
    %c0_i32_1 = arith.constant 0 : i32
    return %c0_i32, %c0_i32_0 : i32, i32
  }
  func.func @transform_7(%arg0: i32) -> (i32, i32) {
    %c0_i32 = arith.constant 0 : i32
    %c0_i32_0 = arith.constant 0 : i32
    %c0_i32_1 = arith.constant 0 : i32
    return %c0_i32, %c0_i32_0 : i32, i32
  }
  func.func @transform_8(%arg0: i32) -> (i32, i32) {
    %c0_i32 = arith.constant 0 : i32
    %c0_i32_0 = arith.constant 0 : i32
    %c0_i32_1 = arith.constant 0 : i32
    return %c0_i32, %c0_i32_0 : i32, i32
  }
  func.func @transform_9(%arg0: i32) -> (i32, i32) {
    %c0_i32 = arith.constant 0 : i32
    %c0_i32_0 = arith.constant 0 : i32
    %c0_i32_1 = arith.constant 0 : i32
    return %c0_i32, %c0_i32_0 : i32, i32
  }
  func.func @transform_10(%arg0: i32) -> (i32, i32) {
    %c0_i32 = arith.constant 0 : i32
    %c0_i32_0 = arith.constant 0 : i32
    %c0_i32_1 = arith.constant 0 : i32
    return %c0_i32, %c0_i32_0 : i32, i32
  }
  func.func @transform_11(%arg0: i32) -> (i32, i32) {
    %c0_i32 = arith.constant 0 : i32
    %c0_i32_0 = arith.constant 0 : i32
    %c0_i32_1 = arith.constant 0 : i32
    return %c0_i32, %c0_i32_0 : i32, i32
  }
  func.func @transform_12(%arg0: i32) -> (i32, i32) {
    %c0_i32 = arith.constant 0 : i32
    %c0_i32_0 = arith.constant 0 : i32
    %c0_i32_1 = arith.constant 0 : i32
    return %c0_i32, %c0_i32_0 : i32, i32
  }
  func.func @transform_13(%arg0: i32) -> (i32, i32) {
    %c0_i32 = arith.constant 0 : i32
    %c0_i32_0 = arith.constant 0 : i32
    %c0_i32_1 = arith.constant 0 : i32
    return %c0_i32, %c0_i32_0 : i32, i32
  }
  func.func @transform_14(%arg0: i32) -> (i32, i32) {
    %c0_i32 = arith.constant 0 : i32
    %c0_i32_0 = arith.constant 0 : i32
    %c0_i32_1 = arith.constant 0 : i32
    return %c0_i32, %c0_i32_0 : i32, i32
  }
  func.func @transform_15(%arg0: i32) -> (i32, i32) {
    %c0_i32 = arith.constant 0 : i32
    %c0_i32_0 = arith.constant 0 : i32
    return %c0_i32, %arg0 : i32, i32
  }
}

</mosaic_0001>

<bundles_post_ra>
// kernel: ecritic_forward.1
= control target key start
LH: loop header
LB: loop body
LE: loop exit
PB: predicated region body
PF: predicated region fallthrough
CT: control target
= control target key end

     0   :  { %s5635_s0 = inlined_call_operand.hbm [shape: f32[2,68], index: 0, kind: input, shape index: {}]   ;;  %s5636_s1 = inlined_call_operand.hbm [shape: f32[2,8], index: 1, kind: input, shape index: {}]   ;;  %s5637_s2 = inlined_call_operand.hbm [shape: bf16[68,384], index: 2, kind: input, shape index: {}]   ;;  %s5638_s3 = inlined_call_operand.vmem [shape: bf16[8,384], index: 3, kind: input, shape index: {}]   ;;  %s5639_s4 = inlined_call_operand.vmem [shape: f32[1,384], index: 4, kind: input, shape index: {}]   ;;  %s5640_s5 = inlined_call_operand.hbm [shape: bf16[384,384], index: 5, kind: input, shape index: {}]   ;;  %s5641_s6 = inlined_call_operand.vmem [shape: f32[1,384], index: 6, kind: input, shape index: {}]   ;;  %s5642_s7 = inlined_call_operand.hbm [shape: bf16[384,384], index: 7, kind: input, shape index: {}]   ;;  %s5643_s8 = inlined_call_operand.vmem [shape: f32[1,384], index: 8, kind: input, shape index: {}]   ;;  %s5644_s9 = inlined_call_operand.hbm [shape: bf16[384,128], index: 9, kind: input, shape index: {}]   ;;  %s5645_s10 = inlined_call_operand.vmem [shape: f32[1,128], index: 10, kind: input, shape index: {}]   ;;  %s5646_s11 = inlined_call_operand.hbm [shape: bf16[128,128], index: 11, kind: input, shape index: {}]   ;;  %s5647_s12 = inlined_call_operand.vmem [shape: f32[1,128], index: 12, kind: input, shape index: {}]   ;;  %s5648_s13 = inlined_call_operand.vmem [shape: f32[1,128], index: 13, kind: input, shape index: {}]   ;;  %s5649_s14 = inlined_call_operand.<no memory space> [shape: f32[1,1], index: 14, kind: input, shape index: {}]   ;;  %s5650_s15 = inlined_call_operand.vmem [shape: f32[1,128], index: 15, kind: output, shape index: {}]  }
   0x1   :  { %v20_v0 = vstv %s5649_s14 }
   0x2   :  { %21 = vst [vmem:[#allocation2] sm:$0x1] %v20_v0 }
   0x3   :  { %22 = vsyncpa [#allocation4], 0 }
   0x4   :  { %23 = vsyncpa [#allocation6], 0 }
   0x5   :  { %24 = vsyncpa [#allocation9], 0 }
   0x6   :  { %25 = vsyncpa [#allocation12], 0 }
   0x7   :  { %30 = vsyncadd [#allocation4], 2016  ;;  %s4952_s20 = smov [#allocation3]   ;;  %s4790_s24 = scalar_lea.hbm %s5635_s0, 32 }
   0x8   :  { %s31_s21 = sshll.u32 %s4952_s20, 4  ;;  %p4791_p0 = scmp.ne.s32.totalorder %s5635_s0, %s4790_s24  ;;  %s32_s21 = int_to_ptr.vmem [resolvable:$true] %s31_s21 }
   0x9   :  { %p4794_p1 = scmp.lt.u32.totalorder %s4790_s24, %s5635_s0 }
   0xb   :  { %p4796_p2 = pnand %p4794_p1, %p4791_p0 }
   0xd   :  { %4799 = shalt.err (!%p4796_p2)
}
   0xe   :  { %s4800_s14 = scalar_lea.vmem %s32_s21, 32  ;;  %s4804_s29 = scalar_lea.vmem %s32_s21, 2048 }
   0xf   :  { %p4801_p3 = scmp.ne.s32.totalorder %s32_s21, %s4800_s14  ;;  %p4805_p4 = scmp.lt.s32.totalorder %s32_s21, %s32_s21 }
  0x10   :  { %p4806_p5 = scmp.lt.s32.totalorder %s4804_s29, %s4800_s14 }
  0x12   :  { %p4807_p6 = por %p4806_p5, %p4805_p4 }
  0x14   :  { %p4808_p7 = pnand %p4807_p6, %p4801_p3 }
  0x16   :  { %4811 = shalt.err (!%p4808_p7)
}
  0x17   :  { %s4953_s30 = smov 32   ;;  %s4954_s16 = smov 2  }
  0x18   :  { %37 = dma.hbm_to_vmem [thread:$0]  %s5635_s0, 32, %s32_s21, [#allocation4], %s4953_s30, %s4953_s30, %s4954_s16  }
  0x19   :  { %42 = vsyncadd [#allocation6], 2016  ;;  %s4955_s19 = smov [#allocation5]   ;;  %s4812_s24 = scalar_lea.hbm %s5636_s1, 32 }
  0x1a   :  { %s43_s20 = sshll.u32 %s4955_s19, 4  ;;  %p4813_p8 = scmp.ne.s32.totalorder %s5636_s1, %s4812_s24  ;;  %s44_s20 = int_to_ptr.vmem [resolvable:$true] %s43_s20 }
  0x1b   :  { %p4816_p9 = scmp.lt.u32.totalorder %s4812_s24, %s5636_s1 }
  0x1d   :  { %p4818_p10 = pnand %p4816_p9, %p4813_p8 }
  0x1f   :  { %4821 = shalt.err (!%p4818_p10)
}
  0x20   :  { %s4822_s14 = scalar_lea.vmem %s44_s20, 32  ;;  %s4826_s0 = scalar_lea.vmem %s44_s20, 2048 }
  0x21   :  { %p4823_p11 = scmp.ne.s32.totalorder %s44_s20, %s4822_s14  ;;  %p4827_p12 = scmp.lt.s32.totalorder %s44_s20, %s44_s20 }
  0x22   :  { %p4828_p13 = scmp.lt.s32.totalorder %s4826_s0, %s4822_s14 }
  0x24   :  { %p4829_p0 = por %p4828_p13, %p4827_p12 }
  0x26   :  { %p4830_p1 = pnand %p4829_p0, %p4823_p11 }
  0x28   :  { %4833 = shalt.err (!%p4830_p1)
}
  0x29   :  { %49 = dma.hbm_to_vmem [thread:$0]  %s5636_s1, 32, %s44_s20, [#allocation6], %s4953_s30, %s4953_s30, %s4954_s16  }
  0x2a   :  { %s4956_s17 = smov [#allocation8]   ;;  %s4957_s19 = smov [#allocation11]  }
  0x2b   :  { %s71_s18 = sshll.u32 %s4956_s17, 4  ;;  %s99_s22 = sshll.u32 %s4957_s19, 4  ;;  %s72_s18 = int_to_ptr.vmem [resolvable:$true] %s71_s18  ;;  %s100_s22 = int_to_ptr.vmem [resolvable:$true] %s99_s22 }
  0x2c   :  { %s4834_s25 = scalar_lea.hbm %s5640_s5, 9216 }
  0x2d   :  { %p4835_p2 = scmp.ne.s32.totalorder %s5640_s5, %s4834_s25  ;;  %p4838_p3 = scmp.lt.u32.totalorder %s4834_s25, %s5640_s5 }
  0x2f   :  { %p4840_p4 = pnand %p4838_p3, %p4835_p2 }
  0x31   :  { %4843 = shalt.err (!%p4840_p4)
}
  0x32   :  { %s4844_s1 = scalar_lea.vmem %s72_s18, 9216  ;;  %p4849_p6 = scmp.lt.s32.totalorder %s72_s18, %s72_s18 }
  0x33   :  { %p4845_p5 = scmp.ne.s32.totalorder %s72_s18, %s4844_s1  ;;  %p4850_p7 = scmp.lt.s32.totalorder %s4844_s1, %s4844_s1 }
  0x35   :  { %p4851_p8 = por %p4850_p7, %p4849_p6 }
  0x37   :  { %p4852_p9 = pnand %p4851_p8, %p4845_p5 }
  0x39   :  { %4855 = shalt.err (!%p4852_p9)
}
  0x3a   :  { %s4958_s30 = smov 192   ;;  %s4959_s16 = smov 12  }
  0x3b   :  { %77 = dma.hbm_to_vmem [thread:$0]  %s5640_s5, 9216, %s72_s18, [#allocation9], %s4958_s30, %s4958_s30, %s4959_s16  }
  0x3c   :  { %s4856_s17 = scalar_lea.hbm %s5644_s9, 3072 }
  0x3d   :  { %p4857_p10 = scmp.ne.s32.totalorder %s5644_s9, %s4856_s17  ;;  %p4860_p11 = scmp.lt.u32.totalorder %s4856_s17, %s5644_s9 }
  0x3f   :  { %p4862_p12 = pnand %p4860_p11, %p4857_p10 }
  0x41   :  { %4865 = shalt.err (!%p4862_p12)
}
  0x42   :  { %s4866_s26 = scalar_lea.vmem %s100_s22, 3072  ;;  %p4871_p0 = scmp.lt.s32.totalorder %s100_s22, %s100_s22 }
  0x43   :  { %p4867_p13 = scmp.ne.s32.totalorder %s100_s22, %s4866_s26  ;;  %p4872_p1 = scmp.lt.s32.totalorder %s4866_s26, %s4866_s26 }
  0x45   :  { %p4873_p2 = por %p4872_p1, %p4871_p0 }
  0x47   :  { %p4874_p3 = pnand %p4873_p2, %p4867_p13 }
  0x49   :  { %4877 = shalt.err (!%p4874_p3)
}
  0x4a   :  { %s4960_s5 = smov 64   ;;  %s4961_s18 = smov 4  }
  0x4b   :  { %105 = dma.hbm_to_vmem [thread:$0]  %s5644_s9, 3072, %s100_s22, [#allocation12], %s4960_s5, %s4960_s5, %s4961_s18  }
  0x4c   :  { %s4962_s14 = smov [#allocation7]   ;;  %s4963_s20 = smov [#allocation10]  }
  0x4d   :  { %s55_s1 = sshll.u32 %s4962_s14, 4  ;;  %s85_s0 = sshll.u32 %s4963_s20, 4  ;;  %s56_s1 = int_to_ptr.vmem [resolvable:$true] %s55_s1  ;;  %s86_s0 = int_to_ptr.vmem [resolvable:$true] %s85_s0 }
  0x4e   :  { %s4878_s17 = scalar_lea.hbm %s5637_s2, 1728 }
  0x4f   :  { %p4879_p4 = scmp.ne.s32.totalorder %s5637_s2, %s4878_s17  ;;  %p4882_p5 = scmp.lt.u32.totalorder %s4878_s17, %s5637_s2 }
  0x51   :  { %p4884_p6 = pnand %p4882_p5, %p4879_p4 }
  0x53   :  { %4887 = shalt.err (!%p4884_p6)
}
  0x54   :  { %s4888_s9 = scalar_lea.vmem %s56_s1, 1728  ;;  %p4893_p8 = scmp.lt.s32.totalorder %s56_s1, %s56_s1 }
  0x55   :  { %p4889_p7 = scmp.ne.s32.totalorder %s56_s1, %s4888_s9  ;;  %p4894_p9 = scmp.lt.s32.totalorder %s4888_s9, %s4888_s9 }
  0x57   :  { %p4895_p10 = por %p4894_p9, %p4893_p8 }
  0x59   :  { %p4896_p11 = pnand %p4895_p10, %p4889_p7 }
  0x5b   :  { %4899 = shalt.err (!%p4896_p11)
}
  0x5c   :  { %61 = dma.hbm_to_vmem [thread:$0]  %s5637_s2, 1728, %s56_s1, [#allocation6], %s4958_s30, %s4958_s30, %s4959_s16  }
  0x5d   :  { %s4900_s14 = scalar_lea.hbm %s5642_s7, 9216 }
  0x5e   :  { %p4901_p12 = scmp.ne.s32.totalorder %s5642_s7, %s4900_s14  ;;  %p4904_p13 = scmp.lt.u32.totalorder %s4900_s14, %s5642_s7 }
  0x60   :  { %p4906_p0 = pnand %p4904_p13, %p4901_p12 }
  0x62   :  { %4909 = shalt.err (!%p4906_p0)
}
  0x63   :  { %s4910_s19 = scalar_lea.vmem %s86_s0, 9216  ;;  %p4915_p2 = scmp.lt.s32.totalorder %s86_s0, %s86_s0 }
  0x64   :  { %p4911_p1 = scmp.ne.s32.totalorder %s86_s0, %s4910_s19  ;;  %p4916_p3 = scmp.lt.s32.totalorder %s4910_s19, %s4910_s19 }
  0x66   :  { %p4917_p4 = por %p4916_p3, %p4915_p2 }
  0x68   :  { %p4918_p5 = pnand %p4917_p4, %p4911_p1 }
  0x6a   :  { %4921 = shalt.err (!%p4918_p5)
}
  0x6b   :  { %91 = dma.hbm_to_vmem [thread:$0]  %s5642_s7, 9216, %s86_s0, [#allocation9], %s4958_s30, %s4958_s30, %s4959_s16  }
  0x6c   :  { %s4964_s23 = smov [#allocation13]   ;;  %s4922_s22 = scalar_lea.hbm %s5646_s11, 1024 }
  0x6d   :  { %s113_s24 = sshll.u32 %s4964_s23, 4  ;;  %p4923_p6 = scmp.ne.s32.totalorder %s5646_s11, %s4922_s22  ;;  %s114_s24 = int_to_ptr.vmem [resolvable:$true] %s113_s24 }
  0x6e   :  { %p4926_p7 = scmp.lt.u32.totalorder %s4922_s22, %s5646_s11 }
  0x70   :  { %p4928_p8 = pnand %p4926_p7, %p4923_p6 }
  0x72   :  { %4931 = shalt.err (!%p4928_p8)
}
  0x73   :  { %s4932_s20 = scalar_lea.vmem %s114_s24, 1024  ;;  %p4937_p10 = scmp.lt.s32.totalorder %s114_s24, %s114_s24 }
  0x74   :  { %p4933_p9 = scmp.ne.s32.totalorder %s114_s24, %s4932_s20  ;;  %p4938_p11 = scmp.lt.s32.totalorder %s4932_s20, %s4932_s20 }
  0x76   :  { %p4939_p12 = por %p4938_p11, %p4937_p10 }
  0x78   :  { %p4940_p13 = pnand %p4939_p12, %p4933_p9 }
  0x7a   :  { %4943 = shalt.err (!%p4940_p13)
}
  0x7b   :  { %119 = dma.hbm_to_vmem [thread:$0]  %s5646_s11, 1024, %s114_s24, [#allocation12], %s4960_s5, %s4960_s5, %s4961_s18  }
  0x7c   :  { %4944 = dma.done.wait [#allocation4], 2048  }
  0x7d   :  { %4945 = vsyncadd [#allocation4], 4294965248 }
  0x7e   :  { %4946 = dma.done.wait [#allocation6], 3776  }
  0x7f   :  { %4947 = vsyncadd [#allocation6], 4294963520 }
  0x80   :  { %4948 = dma.done.wait [#allocation9], 18432  }
  0x81   :  { %4949 = vsyncadd [#allocation9], 4294948864 }
  0x82   :  { %4950 = dma.done.wait [#allocation12], 4096  }
  0x83   :  { %4951 = vsyncadd [#allocation12], 4294963200  ;;  %v4965_v1 = vmov 0   ;;  %v214_v2 = vld [vmem:[%s5638_s3] sm:$0xff]  ;;  %vm249_vm0 = vcmask 1043456   ;;  %v191_v4 = vld [vmem:[#allocation5 + $0x8] sm:$0xff] }
  0x84   :  { %291 = vmatprep.mubr.bf16.mxu0 %v4965_v1  ;;  %4543 = vset.pattern.permute.xlu0 %v4965_v1  ;;  %v190_v3 = vld [vmem:[#allocation5] sm:$0xff]  ;;  %v3593_v5 = vcombine.high %v214_v2, %v214_v2  ;;  %v3592_v6 = vcombine.low %v214_v2, %v214_v2  ;;  %vm224_vm1 = vcmask 64512   ;;  %v4551_v11 = vld [vmem:[#allocation7 + $0x1c] ss:$12 sps:$4 sm:$0xff]   ;;  %v192_v12 = vld [vmem:[#allocation5 + $0x10] sm:$0xff]  ;;  %vm566_vm2 = vcmask 1041408  }
  0x85   :  { %v206_v7 = vpack.c.bf16 %v191_v4, %v190_v3  ;;  %v4548_v8 = vld [vmem:[#allocation7 + $0x4] ss:$12 sps:$4 sm:$0xff]   ;;  %v4546_v10 = vld [vmem:[#allocation7] ss:$12 sps:$4 sm:$0xff]   ;;  %v193_v13 = vld [vmem:[#allocation5 + $0x18] sm:$0xff]  ;;  %vm541_vm3 = vcmask 556032  }
  0x86   :  { %3595 = vmatprep.subr.msk.bf16.mxu0 %vm249_vm0, %v3593_v5  ;;  %v251_v9 = vsel %vm249_vm0, %v3592_v6, 0  ;;  %v4549_v14 = vld [vmem:[#allocation7 + $0x18] ss:$12 sps:$4 sm:$0xff]   ;;  %v4554_v15 = vld [vmem:[#allocation7 + $0x34] ss:$12 sps:$4 sm:$0xff]   ;;  %v207_v16 = vpack.c.bf16 %v193_v13, %v192_v12  ;;  %v195_v21 = vld [vmem:[#allocation5 + $0x28] sm:$0xff] }
  0x87   :  { %4119 = vmatprep.mubr.msk.bf16.mxu1 %vm224_vm1, %v206_v7  ;;  %260 = vmatpush1.bf16.msra.mxu0 %v251_v9  ;;  %v4560_v17 = vld [vmem:[%s5638_s3 + $0x8] ss:$0 sps:$4 sm:$0xff]   ;;  %v4552_v19 = vld [vmem:[#allocation7 + $0x30] ss:$12 sps:$4 sm:$0xff]   ;;  %v4557_v20 = vld [vmem:[#allocation7 + $0x4c] ss:$12 sps:$4 sm:$0xff]  }
  0x88   :  { %576 = vmatprep.subr.bf16.mxu0 %v4548_v8  ;;  %v194_v18 = vld [vmem:[#allocation5 + $0x20] sm:$0xff]  ;;  %4524 = vmatprep.subr.msk.bf16.mxu1 %vm249_vm0, %v4560_v17  ;;  %v257_v23 = vsel %vm249_vm0, %v4560_v17, 0  ;;  %v4561_v24 = vld [vmem:[#allocation7 + $0x8] ss:$12 sps:$4 sm:$0xff]   ;;  %v197_v31 = vld [vmem:[#allocation5 + $0x38] sm:$0xff]  ;;  %vm4967_vm4 = vmmov 0  }
  0x89   :  { %v188_v22 = vld [vmem:[#allocation7 + $0x60] sm:$0x33]  ;;  %4118 = vmatpush3.bf16.msra.mxu1 %v257_v23  ;;  %v4555_v25 = vld [vmem:[#allocation7 + $0x48] ss:$12 sps:$4 sm:$0xff]   ;;  %v208_v26 = vpack.c.bf16 %v195_v21, %v194_v18  ;;  %v4564_v38 = vld [vmem:[#allocation7 + $0x50] ss:$12 sps:$4 sm:$0xff]  }
  0x8a   :  { %3596 = vmatmul.mubr.msk.bf16.vlgmr.msra.gmra.mrb[0].mxu0 %vm224_vm1, %v206_v7  ;;  %v4562_v27 = vld [vmem:[#allocation7 + $0x20] ss:$12 sps:$4 sm:$0xff]   ;;  %v3625_v28 = vcombine.high %v188_v22, %v188_v22  ;;  %v3624_v29 = vcombine.low %v188_v22, %v188_v22  ;;  %4135 = vmatprep.subr.bf16.mxu1 %v4561_v24  ;;  %v196_v30 = vld [vmem:[#allocation5 + $0x30] sm:$0xff]  ;;  %v4563_v35 = vld [vmem:[#allocation7 + $0x38] ss:$12 sps:$4 sm:$0xff]  }
  0x8b   :  { %577 = vmatpush1.bf16.msra.mxu0 %v4546_v10  ;;  %301 = vmatprep.mubr.bf16.mxu0 %v4965_v1  ;;  %v198_v32 = vld [vmem:[#allocation5 + $0x40] sm:$0xff]  ;;  %v199_v33 = vld [vmem:[#allocation5 + $0x48] sm:$0xff]  ;;  %v209_v36 = vpack.c.bf16 %v197_v31, %v196_v30  ;;  %v200_v39 = vld [vmem:[#allocation5 + $0x50] sm:$0xff] }
  0x8c   :  { %578 = vmatprep.subr.bf16.mxu0 %v4551_v11  ;;  %4120 = vmatmul.mubr.msk.bf16.vlgmr.msra.gmra.mrb[0].mxu1 %vm224_vm1, %v207_v16  ;;  %v568_v34 = vsel %vm566_vm2, %v3624_v29, 0  ;;  %v210_v37 = vpack.c.bf16 %v199_v33, %v198_v32  ;;  %v201_v40 = vld [vmem:[#allocation5 + $0x58] sm:$0xff]  ;;  %v4565_v41 = vld [vmem:[#allocation7 + $0x68] ss:$0 sps:$4 sm:$0x33]   ;;  %v202_v42 = vld [vmem:[#allocation5 + $0x60] sm:$0xff] }
  0x8d   :  { %4123 = vmatprep.mubr.msk.bf16.mxu1 %vm224_vm1, %v208_v26  ;;  %4136 = vmatpush3.bf16.msra.mxu1 %v4561_v24  ;;  %v203_v43 = vld [vmem:[#allocation5 + $0x68] sm:$0xff]  ;;  %v211_v44 = vpack.c.bf16 %v201_v40, %v200_v39  ;;  %v574_v46 = vsel %vm566_vm2, %v4565_v41, 0  ;;  %v4568_v47 = vld [vmem:[#allocation8 + $0x4] ss:$12 sps:$4 sm:$0xff]   ;;  %v4593_v49 = vld [vmem:[#allocation8 + $0xc8] ss:$12 sps:$4 sm:$0xff]  }
  0x8e   :  { %4137 = vmatprep.subr.bf16.mxu1 %v4562_v27  ;;  %v212_v45 = vpack.c.bf16 %v203_v43, %v202_v42  ;;  %v204_v48 = vld [vmem:[#allocation5 + $0x70] sm:$0xff]  ;;  %v205_v50 = vld [vmem:[#allocation5 + $0x78] sm:$0xff]  ;;  %v148_v51 = vld [vmem:[#allocation3] sm:$0xff] }
  0x8f   :  { %579 = vmatpush1.bf16.msra.mxu0 %v4549_v14  ;;  %v149_v52 = vld [vmem:[#allocation3 + $0x8] sm:$0xff]  ;;  %v213_v53 = vpack.c.bf16 %v205_v50, %v204_v48  ;;  %v150_v55 = vld [vmem:[#allocation3 + $0x10] sm:$0xff]  ;;  %v151_v56 = vld [vmem:[#allocation3 + $0x18] sm:$0xff] }
  0x90   :  { %580 = vmatprep.subr.bf16.mxu0 %v4554_v15  ;;  %v5184_v54 = vpack.c.bf16 %v149_v52, %v148_v51  ;;  %v152_v57 = vld [vmem:[#allocation3 + $0x20] sm:$0xff]  ;;  %v153_v58 = vld [vmem:[#allocation3 + $0x28] sm:$0xff]  ;;  %v5190_v60 = vpack.c.bf16 %v151_v56, %v150_v55  ;;  %v154_v63 = vld [vmem:[#allocation3 + $0x30] sm:$0xff] }
  0x91   :  { %4138 = vmatpush3.bf16.msra.mxu1 %v4562_v27  ;;  %v4566_v59 = vld [vmem:[#allocation8] ss:$12 sps:$4 sm:$0xff]   ;;  %v4571_v61 = vld [vmem:[#allocation8 + $0x1c] ss:$12 sps:$4 sm:$0xff]   ;;  %v5193_v62 = vpack.c.bf16 %v153_v58, %v152_v57  ;;  %v4569_v2 = vld [vmem:[#allocation8 + $0x18] ss:$12 sps:$4 sm:$0xff]  }
  0x92   :  { %3597 = vmatmul.mubr.msk.bf16.gmra.mrb[4].mxu0 %vm224_vm1, %v207_v16  ;;  %4139 = vmatprep.subr.bf16.mxu1 %v4563_v35  ;;  %v155_v0 = vld [vmem:[#allocation3 + $0x38] sm:$0xff]  ;;  %v156_v3 = vld [vmem:[#allocation3 + $0x40] sm:$0xff]  ;;  %v157_v4 = vld [vmem:[#allocation3 + $0x48] sm:$0xff] }
  0x93   :  { %311 = vmatprep.mubr.bf16.mxu0 %v4965_v1  ;;  %581 = vmatpush1.bf16.msra.mxu0 %v4552_v19  ;;  %v4574_v5 = vld [vmem:[#allocation8 + $0x34] ss:$12 sps:$4 sm:$0xff]   ;;  %v4572_v6 = vld [vmem:[#allocation8 + $0x30] ss:$12 sps:$4 sm:$0xff]   ;;  %v4577_v7 = vld [vmem:[#allocation8 + $0x4c] ss:$12 sps:$4 sm:$0xff]   ;;  %v5200_v8 = vpack.c.bf16 %v155_v0, %v154_v63  ;;  %v5203_v9 = vpack.c.bf16 %v157_v4, %v156_v3 }
  0x94   :  { %582 = vmatprep.subr.bf16.mxu0 %v4557_v20  ;;  %4124 = vmatmul.mubr.msk.bf16.gmra.mrb[4].mxu1 %vm224_vm1, %v209_v36  ;;  %v4575_v10 = vld [vmem:[#allocation8 + $0x48] ss:$12 sps:$4 sm:$0xff]   ;;  %v4580_v11 = vld [vmem:[#allocation8 + $0x64] ss:$12 sps:$4 sm:$0xff]   ;;  %v161_v15 = vld [vmem:[#allocation3 + $0x68] sm:$0xff] }
  0x95   :  { %4127 = vmatprep.mubr.msk.bf16.mxu1 %vm224_vm1, %v210_v37  ;;  %4140 = vmatpush3.bf16.msra.mxu1 %v4563_v35  ;;  %v158_v12 = vld [vmem:[#allocation3 + $0x50] sm:$0xff]  ;;  %v159_v13 = vld [vmem:[#allocation3 + $0x58] sm:$0xff]  ;;  %v160_v14 = vld [vmem:[#allocation3 + $0x60] sm:$0xff] }
  0x96   :  { %4141 = vmatprep.subr.bf16.mxu1 %v4564_v38  ;;  %v4578_v16 = vld [vmem:[#allocation8 + $0x60] ss:$12 sps:$4 sm:$0xff]   ;;  %v4583_v17 = vld [vmem:[#allocation8 + $0x7c] ss:$12 sps:$4 sm:$0xff]   ;;  %v5210_v18 = vpack.c.bf16 %v159_v13, %v158_v12  ;;  %v5213_v19 = vpack.c.bf16 %v161_v15, %v160_v14  ;;  %v4581_v22 = vld [vmem:[#allocation8 + $0x78] ss:$12 sps:$4 sm:$0xff]  }
  0x97   :  { %583 = vmatpush1.bf16.msra.mxu0 %v4555_v25  ;;  %v162_v20 = vld [vmem:[#allocation3 + $0x70] sm:$0xff]  ;;  %v163_v21 = vld [vmem:[#allocation3 + $0x78] sm:$0xff]  ;;  %v4586_v23 = vld [vmem:[#allocation8 + $0x94] ss:$12 sps:$4 sm:$0xff]  }
  0x98   :  { %3627 = vmatprep.subr.msk.bf16.mxu0 %vm566_vm2, %v3625_v28  ;;  %v4594_v24 = vld [vmem:[#allocation8 + $0x8] ss:$12 sps:$4 sm:$0xff]   ;;  %v4598_v25 = vld [vmem:[#allocation8 + $0xe0] ss:$12 sps:$4 sm:$0xff]   ;;  %v5219_v27 = vpack.c.bf16 %v163_v21, %v162_v20  ;;  %v4603_v30 = vld [vmem:[#allocation8 + $0xf8] ss:$12 sps:$4 sm:$0xff]  }
  0x99   :  { %4142 = vmatpush3.bf16.msra.mxu1 %v4564_v38  ;;  %v4589_v28 = vld [vmem:[#allocation8 + $0xac] ss:$12 sps:$4 sm:$0xff]   ;;  %v4587_v31 = vld [vmem:[#allocation8 + $0xa8] ss:$12 sps:$4 sm:$0xff]   ;;  %v4592_v32 = vld [vmem:[#allocation8 + $0xc4] ss:$12 sps:$4 sm:$0xff]  }
  0x9a   :  { %3598 = vmatmul.mubr.msk.bf16.gmra.mrb[8].mxu0 %vm224_vm1, %v208_v26  ;;  %4525 = vmatprep.subr.msk.bf16.mxu1 %vm566_vm2, %v4565_v41  ;;  %v4584_v26 = vld [vmem:[#allocation8 + $0x90] ss:$12 sps:$4 sm:$0xff]   ;;  %v4599_v29 = vld [vmem:[#allocation8 + $0x20] ss:$12 sps:$4 sm:$0xff]   ;;  %v4604_v33 = vld [vmem:[#allocation8 + $0x38] ss:$12 sps:$4 sm:$0xff]  }
  0x9b   :  { %321 = vmatprep.mubr.bf16.mxu0 %v4965_v1  ;;  %585 = vmatpush1.bf16.msra.mxu0 %v568_v34  ;;  %v4608_v34 = vld [vmem:[#allocation8 + $0x110] ss:$12 sps:$4 sm:$0xff]   ;;  %v4590_v35 = vld [vmem:[#allocation8 + $0xc0] ss:$12 sps:$4 sm:$0xff]   ;;  %v4613_v38 = vld [vmem:[#allocation8 + $0x128] ss:$12 sps:$4 sm:$0xff]  }
  0x9c   :  { %4128 = vmatmul.mubr.msk.bf16.gmra.mrb[8].mxu1 %vm224_vm1, %v211_v44  ;;  %3844 = vmatprep.subr.bf16.mxu0 %v4593_v49  ;;  %v4595_v39 = vld [vmem:[#allocation8 + $0xd8] ss:$12 sps:$4 sm:$0xff]   ;;  %v4602_v40 = vld [vmem:[#allocation8 + $0xf4] ss:$12 sps:$4 sm:$0xff]   ;;  %v4600_v43 = vld [vmem:[#allocation8 + $0xf0] ss:$12 sps:$4 sm:$0xff]  }
  0x9d   :  { %4131 = vmatprep.mubr.msk.bf16.mxu1 %vm224_vm1, %v212_v45  ;;  %4144 = vmatpush3.bf16.msra.mxu1 %v574_v46  ;;  %v4614_v41 = vld [vmem:[#allocation8 + $0x68] ss:$12 sps:$4 sm:$0xff]   ;;  %v4618_v42 = vld [vmem:[#allocation8 + $0x140] ss:$12 sps:$4 sm:$0xff]   ;;  %v4612_v46 = vld [vmem:[#allocation8 + $0x124] ss:$12 sps:$4 sm:$0xff]  }
  0x9e   :  { %1420 = vmatprep.subr.bf16.mxu1 %v4568_v47  ;;  %v4610_v47 = vld [vmem:[#allocation8 + $0x120] ss:$12 sps:$4 sm:$0xff]   ;;  %v4617_v48 = vld [vmem:[#allocation8 + $0x13c] ss:$12 sps:$4 sm:$0xff]   ;;  %v4615_v49 = vld [vmem:[#allocation8 + $0x138] ss:$12 sps:$4 sm:$0xff]  }
  0x9f   :  { %v4619_v50 = vld [vmem:[#allocation8 + $0x80] ss:$12 sps:$4 sm:$0xff]   ;;  %v4623_v52 = vld [vmem:[#allocation8 + $0x158] ss:$12 sps:$4 sm:$0xff]   ;;  %v4628_v56 = vld [vmem:[#allocation8 + $0x170] ss:$12 sps:$4 sm:$0xff]  }
  0xa0   :  { %v4622_v51 = vld [vmem:[#allocation8 + $0x154] ss:$12 sps:$4 sm:$0xff]   ;;  %v4627_v55 = vld [vmem:[#allocation8 + $0x16c] ss:$12 sps:$4 sm:$0xff]   ;;  %v4629_v58 = vld [vmem:[#allocation8 + $0xb0] ss:$12 sps:$4 sm:$0xff]  }
  0xa1   :  { %v4625_v57 = vld [vmem:[#allocation8 + $0x168] ss:$12 sps:$4 sm:$0xff]  }
  0xa2   :  { %3599 = vmatmul.mubr.msk.bf16.gmra.mrb[12].mxu0 %vm224_vm1, %v209_v36  ;;  %v4597_v36 = vld [vmem:[#allocation8 + $0xdc] ss:$12 sps:$4 sm:$0xff]   ;;  %v786_v0 = vld [vmem:[%s5639_s4] sm:$0x7] }
  0xa3   :  { %331 = vmatprep.mubr.bf16.mxu0 %v4965_v1 }
  0xa4   :  { %4132 = vmatmul.mubr.msk.bf16.gmra.mrb[12].mxu1 %vm224_vm1, %v213_v53 }
  0xa5   :  { %4145 = vmatprep.mubr.msk.bf16.mxu1 %vm541_vm3, %v5184_v54 }
  0xaa   :  { %3600 = vmatmul.mubr.msk.bf16.gmra.mrb[16].mxu0 %vm224_vm1, %v210_v37  ;;  %v4609_v37 = vld [vmem:[#allocation8 + $0x50] ss:$12 sps:$4 sm:$0xff]  }
  0xab   :  { %341 = vmatprep.mubr.bf16.mxu0 %v4965_v1 }
  0xac   :  { %4146 = vmatmul.mubr.msk.bf16.vlgmr.msra.gmra.mrb[0].mxu1 %vm541_vm3, %v5190_v60 }
  0xad   :  { %4149 = vmatprep.mubr.msk.bf16.mxu1 %vm541_vm3, %v5193_v62  ;;  %1421 = vmatpush1.bf16.msra.mxu1 %v4566_v59  ;;  %v4632_v59 = vld [vmem:[#allocation8 + $0x184] ss:$12 sps:$4 sm:$0xff]  }
  0xae   :  { %1422 = vmatprep.subr.bf16.mxu1 %v4571_v61  ;;  %v788_v61 = vlaneseq }
  0xb1   :  { %1423 = vmatpush1.bf16.msra.mxu1 %v4569_v2 }
  0xb2   :  { %3601 = vmatmul.mubr.msk.bf16.gmra.mrb[20].mxu0 %vm224_vm1, %v211_v44  ;;  %1424 = vmatprep.subr.bf16.mxu1 %v4574_v5  ;;  %v4607_v44 = vld [vmem:[#allocation8 + $0x10c] ss:$12 sps:$4 sm:$0xff]  }
  0xb3   :  { %351 = vmatprep.mubr.bf16.mxu0 %v4965_v1 }
  0xb4   :  { %4150 = vmatmul.mubr.msk.bf16.gmra.mrb[4].mxu1 %vm541_vm3, %v5200_v8 }
  0xb5   :  { %4153 = vmatprep.mubr.msk.bf16.mxu1 %vm541_vm3, %v5203_v9  ;;  %1425 = vmatpush1.bf16.msra.mxu1 %v4572_v6 }
  0xb6   :  { %1426 = vmatprep.subr.bf16.mxu1 %v4577_v7 }
  0xb9   :  { %1427 = vmatpush1.bf16.msra.mxu1 %v4575_v10 }
  0xba   :  { %3602 = vmatmul.mubr.msk.bf16.gmra.mrb[24].mxu0 %vm224_vm1, %v212_v45  ;;  %1428 = vmatprep.subr.bf16.mxu1 %v4580_v11  ;;  %v4605_v45 = vld [vmem:[#allocation8 + $0x108] ss:$12 sps:$4 sm:$0xff]  }
  0xbb   :  { %361 = vmatprep.mubr.bf16.mxu0 %v4965_v1 }
  0xbc   :  { %4154 = vmatmul.mubr.msk.bf16.gmra.mrb[8].mxu1 %vm541_vm3, %v5210_v18 }
  0xbd   :  { %4157 = vmatprep.mubr.msk.bf16.mxu1 %vm541_vm3, %v5213_v19  ;;  %1429 = vmatpush1.bf16.msra.mxu1 %v4578_v16 }
  0xbe   :  { %1430 = vmatprep.subr.bf16.mxu1 %v4583_v17 }
  0xc1   :  { %1431 = vmatpush1.bf16.msra.mxu1 %v4581_v22 }
  0xc2   :  { %3603 = vmatmul.mubr.msk.bf16.gmra.mrb[28].mxu0 %vm224_vm1, %v213_v53  ;;  %1432 = vmatprep.subr.bf16.mxu1 %v4586_v23  ;;  %v4620_v53 = vld [vmem:[#allocation8 + $0x150] ss:$12 sps:$4 sm:$0xff]  }
  0xc3   :  { %608 = vmatprep.mubr.bf16.mxu0 %v4965_v1 }
  0xc4   :  { %4158 = vmatmul.mubr.msk.bf16.gmra.mrb[12].mxu1 %vm541_vm3, %v5219_v27 }
  0xc5   :  { %1433 = vmatpush1.bf16.msra.mxu1 %v4584_v26 }
  0xc6   :  { %1434 = vmatprep.subr.bf16.mxu1 %v4589_v28 }
  0xc9   :  { %1435 = vmatpush1.bf16.msra.mxu1 %v4587_v31 }
  0xca   :  { %3628 = vmatmul.mubr.msk.bf16.vlgmr.msra.gmra.mrb[0].mxu0 %vm541_vm3, %v5184_v54  ;;  %1436 = vmatprep.subr.bf16.mxu1 %v4592_v32  ;;  %v4624_v54 = vld [vmem:[#allocation8 + $0x98] ss:$12 sps:$4 sm:$0xff]  }
  0xcb   :  { %618 = vmatprep.mubr.bf16.mxu0 %v4965_v1  ;;  %3845 = vmatpush3.bf16.msra.mxu0 %v4594_v24 }
  0xcc   :  { %3846 = vmatprep.subr.bf16.mxu0 %v4598_v25 }
  0xcd   :  { %1437 = vmatpush1.bf16.msra.mxu1 %v4590_v35 }
  0xce   :  { %1438 = vmatprep.subr.bf16.mxu1 %v4597_v36 }
  0xcf   :  { %3847 = vmatpush3.bf16.msra.mxu0 %v4599_v29 }
  0xd0   :  { %3848 = vmatprep.subr.bf16.mxu0 %v4603_v30 }
  0xd1   :  { %1439 = vmatpush1.bf16.msra.mxu1 %v4595_v39 }
  0xd2   :  { %3629 = vmatmul.mubr.msk.bf16.gmra.mrb[4].mxu0 %vm541_vm3, %v5190_v60  ;;  %1440 = vmatprep.subr.bf16.mxu1 %v4602_v40  ;;  %v5246_v60 = vld [vmem:[#allocation8 + $0x188] ss:$12 sps:$4 sm:$0xff]  }
  0xd3   :  { %628 = vmatprep.mubr.bf16.mxu0 %v4965_v1  ;;  %3849 = vmatpush3.bf16.msra.mxu0 %v4604_v33 }
  0xd4   :  { %3850 = vmatprep.subr.bf16.mxu0 %v4608_v34 }
  0xd5   :  { %1441 = vmatpush1.bf16.msra.mxu1 %v4600_v43 }
  0xd6   :  { %1442 = vmatprep.subr.bf16.mxu1 %v4607_v44 }
  0xd7   :  { %3851 = vmatpush3.bf16.msra.mxu0 %v4609_v37 }
  0xd8   :  { %3852 = vmatprep.subr.bf16.mxu0 %v4613_v38 }
  0xd9   :  { %1443 = vmatpush1.bf16.msra.mxu1 %v4605_v45 }
  0xda   :  { %3630 = vmatmul.mubr.msk.bf16.gmra.mrb[8].mxu0 %vm541_vm3, %v5193_v62  ;;  %1444 = vmatprep.subr.bf16.mxu1 %v4612_v46  ;;  %v789_v62 = vshrl.u32 %v788_v61, 7 }
  0xdb   :  { %638 = vmatprep.mubr.bf16.mxu0 %v4965_v1  ;;  %3853 = vmatpush3.bf16.msra.mxu0 %v4614_v41 }
  0xdc   :  { %3854 = vmatprep.subr.bf16.mxu0 %v4618_v42  ;;  %v5249_v63 = vsub.s32 2, %v789_v62  ;;  %v5269_v29 = vsub.s32 0, %v789_v62  ;;  %v5273_v31 = vsub.s32 1, %v789_v62 }
  0xdd   :  { %1445 = vmatpush1.bf16.msra.mxu1 %v4610_v47 }
  0xde   :  { %1446 = vmatprep.subr.bf16.mxu1 %v4617_v48  ;;  %v5255_v2 = vrot.slane %v786_v0, %v5249_v63  ;;  %v5280_v38 = vrot.slane %v786_v0, %v5269_v29  ;;  %v5284_v42 = vrot.slane %v786_v0, %v5273_v31 }
  0xdf   :  { %3855 = vmatpush3.bf16.msra.mxu0 %v4619_v50 }
  0xe0   :  { %3856 = vmatprep.subr.bf16.mxu0 %v4623_v52 }
  0xe1   :  { %1447 = vmatpush1.bf16.msra.mxu1 %v4615_v49 }
  0xe2   :  { %3631 = vmatmul.mubr.msk.bf16.gmra.mrb[12].mxu0 %vm541_vm3, %v5200_v8  ;;  %1448 = vmatprep.subr.bf16.mxu1 %v4622_v51 }
  0xe3   :  { %648 = vmatprep.mubr.bf16.mxu0 %v4965_v1  ;;  %3857 = vmatpush3.bf16.msra.mxu0 %v4624_v54 }
  0xe4   :  { %3858 = vmatprep.subr.bf16.mxu0 %v4628_v56 }
  0xe5   :  { %1449 = vmatpush1.bf16.msra.mxu1 %v4620_v53 }
  0xe6   :  { %1450 = vmatprep.subr.bf16.mxu1 %v4627_v55 }
  0xe7   :  { %3859 = vmatpush3.bf16.msra.mxu0 %v4629_v58 }
  0xe8   :  { %4161 = vmatprep.subr.bf16.mxu0 %v5246_v60 }
  0xe9   :  { %1451 = vmatpush1.bf16.msra.mxu1 %v4625_v57 }
  0xea   :  { %3632 = vmatmul.mubr.msk.bf16.gmra.mrb[16].mxu0 %vm541_vm3, %v5203_v9  ;;  %1533 = vmatprep.subr.bf16.mxu1 %v4632_v59 }
  0xeb   :  { %658 = vmatprep.mubr.bf16.mxu0 %v4965_v1 }
  0xf2   :  { %3633 = vmatmul.mubr.msk.bf16.gmra.mrb[20].mxu0 %vm541_vm3, %v5210_v18 }
  0xf3   :  { %668 = vmatprep.mubr.bf16.mxu0 %v4965_v1 }
  0xfa   :  { %3634 = vmatmul.mubr.msk.bf16.gmra.mrb[24].mxu0 %vm541_vm3, %v5213_v19 }
  0xfb   :  { %678 = vmatprep.mubr.bf16.mxu0 %v4965_v1 }
 0x102   :  { %3635 = vmatmul.mubr.msk.bf16.gmra.mrb[28].mxu0 %vm541_vm3, %v5219_v27 }
 0x17f   :  { %v4147_v3 = vpop.f32.mrb[0].mxu1 }
 0x180   :  { %v811_v4 = vadd.f32 %v4147_v3, %v5255_v2  ;;  %v723_v5 = vpop.f32.mrb[1].mxu1 }
 0x181   :  { %v805_v6 = vadd.f32 %v5255_v2, %v723_v5  ;;  %v4148_v7 = vpop.f32.mrb[2].mxu1 }
 0x182   :  { %v859_v8 = vmax.f32 %v811_v4, 0.0  ;;  %v814_v9 = vadd.f32 %v4148_v7, %v5255_v2  ;;  %v726_v10 = vpop.f32.mrb[3].mxu1 }
 0x183   :  { %v853_v11 = vmax.f32 %v805_v6, 0.0  ;;  %v808_v12 = vadd.f32 %v5255_v2, %v726_v10 }
 0x184   :  { %v862_v13 = vmax.f32 %v814_v9, 0.0 }
 0x185   :  { %v856_v14 = vmax.f32 %v808_v12, 0.0 }
 0x186   :  { %v5261_v15 = vpack.c.bf16 %v862_v13, %v859_v8 }
 0x187   :  { %v5263_v16 = vpack.c.bf16 %v856_v14, %v853_v11  ;;  %v4151_v17 = vpop.f32.mrb[4].mxu1 }
 0x188   :  { %v823_v18 = vadd.f32 %v4151_v17, %v5255_v2  ;;  %v739_v19 = vpop.f32.mrb[5].mxu1  ;;  %v4630_v17 = vld [vmem:[#allocation8 + $0x180] ss:$12 sps:$4 sm:$0xff]  }
 0x189   :  { %v817_v20 = vadd.f32 %v5255_v2, %v739_v19  ;;  %v4152_v21 = vpop.f32.mrb[6].mxu1 }
 0x18a   :  { %v871_v22 = vmax.f32 %v823_v18, 0.0  ;;  %v826_v23 = vadd.f32 %v4152_v21, %v5255_v2  ;;  %v742_v24 = vpop.f32.mrb[7].mxu1  ;;  %v4635_v21 = vld [vmem:[#allocation8 + $0x19c] ss:$12 sps:$4 sm:$0xff]  }
 0x18b   :  { %v865_v25 = vmax.f32 %v817_v20, 0.0  ;;  %v820_v26 = vadd.f32 %v5255_v2, %v742_v24 }
 0x18c   :  { %v874_v27 = vmax.f32 %v826_v23, 0.0 }
 0x18d   :  { %v868_v28 = vmax.f32 %v820_v26, 0.0 }
 0x18e   :  { %v5271_v30 = vpack.c.bf16 %v874_v27, %v871_v22  ;;  %v4646_v22 = vld [vmem:[#allocation8 + $0x1a0] ss:$12 sps:$4 sm:$0xff]  }
 0x18f   :  { %v5275_v32 = vpack.c.bf16 %v868_v28, %v865_v25  ;;  %v4155_v33 = vpop.f32.mrb[8].mxu1 }
 0x190   :  { %v835_v34 = vadd.f32 %v4155_v33, %v5255_v2  ;;  %v755_v35 = vpop.f32.mrb[9].mxu1  ;;  %v4633_v33 = vld [vmem:[#allocation8 + $0x198] ss:$12 sps:$4 sm:$0xff]  }
 0x191   :  { %v829_v36 = vadd.f32 %v5255_v2, %v755_v35  ;;  %v4156_v37 = vpop.f32.mrb[10].mxu1 }
 0x192   :  { %v883_v39 = vmax.f32 %v835_v34, 0.0  ;;  %v838_v40 = vadd.f32 %v4156_v37, %v5255_v2  ;;  %v758_v41 = vpop.f32.mrb[11].mxu1  ;;  %v4650_v37 = vld [vmem:[#allocation8 + $0x1b8] ss:$12 sps:$4 sm:$0xff]  }
 0x193   :  { %v877_v43 = vmax.f32 %v829_v36, 0.0  ;;  %v832_v44 = vadd.f32 %v5255_v2, %v758_v41  ;;  %v4638_v36 = vld [vmem:[#allocation8 + $0x1b4] ss:$12 sps:$4 sm:$0xff]  }
 0x194   :  { %v886_v45 = vmax.f32 %v838_v40, 0.0 }
 0x195   :  { %v880_v47 = vmax.f32 %v832_v44, 0.0 }
 0x196   :  { %v5288_v50 = vpack.c.bf16 %v886_v45, %v883_v39  ;;  %v4636_v45 = vld [vmem:[#allocation8 + $0x1b0] ss:$12 sps:$4 sm:$0xff]  }
 0x197   :  { %v5291_v53 = vpack.c.bf16 %v880_v47, %v877_v43  ;;  %v4159_v54 = vpop.f32.mrb[12].mxu1 }
 0x198   :  { %v847_v57 = vadd.f32 %v4159_v54, %v5255_v2  ;;  %v771_v58 = vpop.f32.mrb[13].mxu1 }
 0x199   :  { %v841_v61 = vadd.f32 %v5255_v2, %v771_v58  ;;  %v4160_v62 = vpop.f32.mrb[14].mxu1 }
 0x19a   :  { %v895_v4 = vmax.f32 %v847_v57, 0.0  ;;  %v850_v5 = vadd.f32 %v4160_v62, %v5255_v2  ;;  %v774_v6 = vpop.f32.mrb[15].mxu1 }
 0x19b   :  { %v889_v9 = vmax.f32 %v841_v61, 0.0  ;;  %v844_v10 = vadd.f32 %v5255_v2, %v774_v6  ;;  %v4655_v61 = vld [vmem:[#allocation8 + $0x1e8] ss:$12 sps:$4 sm:$0xff]   ;;  %v4642_v6 = vld [vmem:[#allocation8 + $0x1e0] ss:$12 sps:$4 sm:$0xff]  }
 0x19c   :  { %v898_v12 = vmax.f32 %v850_v5, 0.0 }
 0x19d   :  { %v610_v46 = vpop.f32.mrb[0].mxu0  ;;  %v892_v18 = vmax.f32 %v844_v10, 0.0  ;;  %v4656_v10 = vld [vmem:[#allocation8 + $0x200] ss:$12 sps:$4 sm:$0xff]  }
 0x19e   :  { %v803_v48 = vadd.f32 %v5280_v38, %v610_v46  ;;  %v612_v49 = vpop.f32.mrb[1].mxu0  ;;  %v5300_v23 = vpack.c.bf16 %v898_v12, %v895_v4 }
 0x19f   :  { %v804_v51 = vadd.f32 %v5284_v42, %v612_v49  ;;  %v614_v52 = vpop.f32.mrb[2].mxu0  ;;  %v5303_v26 = vpack.c.bf16 %v892_v18, %v889_v9  ;;  %v4649_v9 = vld [vmem:[#allocation8 + $0x1fc] ss:$12 sps:$4 sm:$0xff]   ;;  %v4647_v18 = vld [vmem:[#allocation8 + $0x1f8] ss:$12 sps:$4 sm:$0xff]  }
 0x1a0   :  { %v806_v55 = vadd.f32 %v5280_v38, %v614_v52  ;;  %v616_v56 = vpop.f32.mrb[3].mxu0  ;;  %v851_v0 = vmax.f32 %v803_v48, 0.0  ;;  %v4641_v48 = vld [vmem:[#allocation8 + $0x1cc] ss:$12 sps:$4 sm:$0xff]  }
 0x1a1   :  { %v807_v59 = vadd.f32 %v5284_v42, %v616_v56  ;;  %v852_v7 = vmax.f32 %v804_v51, 0.0  ;;  %v4639_v56 = vld [vmem:[#allocation8 + $0x1c8] ss:$12 sps:$4 sm:$0xff]  }
 0x1a2   :  { %v854_v3 = vmax.f32 %v806_v55, 0.0 }
 0x1a3   :  { %v855_v8 = vmax.f32 %v807_v59, 0.0  ;;  %v4644_v59 = vld [vmem:[#allocation8 + $0x1e4] ss:$12 sps:$4 sm:$0xff]  }
 0x1a4   :  { %v899_v11 = vpack.c.bf16 %v854_v3, %v851_v0 }
 0x1a5   :  { %v900_v13 = vpack.c.bf16 %v855_v8, %v852_v7  ;;  %v620_v14 = vpop.f32.mrb[4].mxu0 }
 0x1a6   :  { %v809_v19 = vadd.f32 %v5280_v38, %v620_v14  ;;  %v622_v20 = vpop.f32.mrb[5].mxu0 }
 0x1a7   :  { %v810_v24 = vadd.f32 %v5284_v42, %v622_v20  ;;  %v624_v25 = vpop.f32.mrb[6].mxu0  ;;  %1452 = vmatprep.mubr.bf16.mxu1 %v900_v13  ;;  %1678 = vmatprep.mubr.bf16.mxu0 %v900_v13 }
 0x1a8   :  { %v812_v2 = vadd.f32 %v5280_v38, %v624_v25  ;;  %v626_v27 = vpop.f32.mrb[7].mxu0  ;;  %1453 = vmatmul.mubr.bf16.vlgmr.msra.gmra.mrb[16].mxu1 %v899_v11  ;;  %1679 = vmatmul.mubr.bf16.vlgmr.msra.gmra.mrb[32].mxu0 %v899_v11  ;;  %v857_v34 = vmax.f32 %v809_v19, 0.0 }
 0x1a9   :  { %v813_v28 = vadd.f32 %v5284_v42, %v626_v27  ;;  %1534 = vmatpush1.bf16.msra.mxu1 %v4630_v17  ;;  %4162 = vmatpush3.bf16.msra.mxu0 %v5246_v60  ;;  %v858_v39 = vmax.f32 %v810_v24, 0.0  ;;  %v4651_v60 = vld [vmem:[#allocation8 + $0x1d0] ss:$12 sps:$4 sm:$0xff]  }
 0x1aa   :  { %v860_v35 = vmax.f32 %v812_v2, 0.0  ;;  %1535 = vmatprep.subr.bf16.mxu1 %v4635_v21  ;;  %4163 = vmatprep.subr.bf16.mxu0 %v4646_v22  ;;  %v4654_v21 = vld [vmem:[#allocation8 + $0x214] ss:$12 sps:$4 sm:$0xff]  }
 0x1ab   :  { %v861_v40 = vmax.f32 %v813_v28, 0.0 }
 0x1ac   :  { %v902_v41 = vpack.c.bf16 %v860_v35, %v857_v34 }
 0x1ad   :  { %v903_v43 = vpack.c.bf16 %v861_v40, %v858_v39  ;;  %v630_v44 = vpop.f32.mrb[8].mxu0  ;;  %1536 = vmatpush1.bf16.msra.mxu1 %v4633_v33  ;;  %4164 = vmatpush3.bf16.msra.mxu0 %v4646_v22  ;;  %v4660_v22 = vld [vmem:[#allocation8 + $0x218] ss:$12 sps:$4 sm:$0xff]   ;;  %v4652_v33 = vld [vmem:[#allocation8 + $0x210] ss:$12 sps:$4 sm:$0xff]  }
 0x1ae   :  { %v815_v46 = vadd.f32 %v5280_v38, %v630_v44  ;;  %v632_v47 = vpop.f32.mrb[9].mxu0  ;;  %1537 = vmatprep.subr.bf16.mxu1 %v4638_v36  ;;  %4165 = vmatprep.subr.bf16.mxu0 %v4650_v37  ;;  %v4659_v36 = vld [vmem:[#allocation8 + $0x22c] ss:$12 sps:$4 sm:$0xff]  }
 0x1af   :  { %v816_v49 = vadd.f32 %v5284_v42, %v632_v47  ;;  %v634_v51 = vpop.f32.mrb[10].mxu0  ;;  %1462 = vmatprep.mubr.bf16.mxu1 %v903_v43  ;;  %1686 = vmatprep.mubr.bf16.mxu0 %v903_v43 }
 0x1b0   :  { %v818_v52 = vadd.f32 %v5280_v38, %v634_v51  ;;  %v636_v54 = vpop.f32.mrb[11].mxu0  ;;  %1463 = vmatmul.mubr.bf16.gmra.mrb[20].mxu1 %v902_v41  ;;  %1687 = vmatmul.mubr.bf16.gmra.mrb[36].mxu0 %v902_v41  ;;  %v863_v57 = vmax.f32 %v815_v46, 0.0 }
 0x1b1   :  { %v819_v55 = vadd.f32 %v5284_v42, %v636_v54  ;;  %1538 = vmatpush1.bf16.msra.mxu1 %v4636_v45  ;;  %4166 = vmatpush3.bf16.msra.mxu0 %v4650_v37  ;;  %v864_v62 = vmax.f32 %v816_v49, 0.0  ;;  %v4661_v37 = vld [vmem:[#allocation8 + $0x230] ss:$12 sps:$4 sm:$0xff]   ;;  %v4657_v45 = vld [vmem:[#allocation8 + $0x228] ss:$12 sps:$4 sm:$0xff]  }
 0x1b2   :  { %v866_v58 = vmax.f32 %v818_v52, 0.0  ;;  %1539 = vmatprep.subr.bf16.mxu1 %v4641_v48  ;;  %4167 = vmatprep.subr.bf16.mxu0 %v4651_v60 }
 0x1b3   :  { %v867_v0 = vmax.f32 %v819_v55, 0.0 }
 0x1b4   :  { %v905_v3 = vpack.c.bf16 %v866_v58, %v863_v57 }
 0x1b5   :  { %v906_v4 = vpack.c.bf16 %v867_v0, %v864_v62  ;;  %v640_v5 = vpop.f32.mrb[12].mxu0  ;;  %1540 = vmatpush1.bf16.msra.mxu1 %v4639_v56  ;;  %4168 = vmatpush3.bf16.msra.mxu0 %v4651_v60 }
 0x1b6   :  { %v821_v7 = vadd.f32 %v5280_v38, %v640_v5  ;;  %v642_v8 = vpop.f32.mrb[13].mxu0  ;;  %1541 = vmatprep.subr.bf16.mxu1 %v4644_v59  ;;  %4169 = vmatprep.subr.bf16.mxu0 %v4655_v61 }
 0x1b7   :  { %v822_v11 = vadd.f32 %v5284_v42, %v642_v8  ;;  %v644_v12 = vpop.f32.mrb[14].mxu0  ;;  %1472 = vmatprep.mubr.bf16.mxu1 %v906_v4  ;;  %1694 = vmatprep.mubr.bf16.mxu0 %v906_v4 }
 0x1b8   :  { %v824_v13 = vadd.f32 %v5280_v38, %v644_v12  ;;  %v646_v14 = vpop.f32.mrb[15].mxu0  ;;  %1473 = vmatmul.mubr.bf16.gmra.mrb[24].mxu1 %v905_v3  ;;  %1695 = vmatmul.mubr.bf16.gmra.mrb[40].mxu0 %v905_v3  ;;  %v869_v19 = vmax.f32 %v821_v7, 0.0 }
 0x1b9   :  { %v825_v17 = vadd.f32 %v5284_v42, %v646_v14  ;;  %1542 = vmatpush1.bf16.msra.mxu1 %v4642_v6  ;;  %4170 = vmatpush3.bf16.msra.mxu0 %v4655_v61  ;;  %v870_v24 = vmax.f32 %v822_v11, 0.0 }
 0x1ba   :  { %v872_v20 = vmax.f32 %v824_v13, 0.0  ;;  %1543 = vmatprep.subr.bf16.mxu1 %v4649_v9  ;;  %4171 = vmatprep.subr.bf16.mxu0 %v4656_v10 }
 0x1bb   :  { %v873_v25 = vmax.f32 %v825_v17, 0.0 }
 0x1bc   :  { %v908_v2 = vpack.c.bf16 %v872_v20, %v869_v19 }
 0x1bd   :  { %v909_v27 = vpack.c.bf16 %v873_v25, %v870_v24  ;;  %v650_v28 = vpop.f32.mrb[16].mxu0  ;;  %1544 = vmatpush1.bf16.msra.mxu1 %v4647_v18  ;;  %4172 = vmatpush3.bf16.msra.mxu0 %v4656_v10 }
 0x1be   :  { %v827_v34 = vadd.f32 %v5280_v38, %v650_v28  ;;  %v652_v35 = vpop.f32.mrb[17].mxu0  ;;  %1545 = vmatprep.subr.bf16.mxu1 %v4654_v21  ;;  %4173 = vmatprep.subr.bf16.mxu0 %v4660_v22 }
 0x1bf   :  { %v828_v39 = vadd.f32 %v5284_v42, %v652_v35  ;;  %v654_v40 = vpop.f32.mrb[18].mxu0  ;;  %1482 = vmatprep.mubr.bf16.mxu1 %v909_v27  ;;  %1702 = vmatprep.mubr.bf16.mxu0 %v909_v27 }
 0x1c0   :  { %v830_v41 = vadd.f32 %v5280_v38, %v654_v40  ;;  %v656_v43 = vpop.f32.mrb[19].mxu0  ;;  %1483 = vmatmul.mubr.bf16.gmra.mrb[28].mxu1 %v908_v2  ;;  %1703 = vmatmul.mubr.bf16.gmra.mrb[44].mxu0 %v908_v2  ;;  %v875_v46 = vmax.f32 %v827_v34, 0.0 }
 0x1c1   :  { %v831_v44 = vadd.f32 %v5284_v42, %v656_v43  ;;  %1546 = vmatpush1.bf16.msra.mxu1 %v4652_v33  ;;  %4174 = vmatpush3.bf16.msra.mxu0 %v4660_v22  ;;  %v876_v48 = vmax.f32 %v828_v39, 0.0 }
 0x1c2   :  { %v878_v47 = vmax.f32 %v830_v41, 0.0  ;;  %1547 = vmatprep.subr.bf16.mxu1 %v4659_v36  ;;  %4175 = vmatprep.subr.bf16.mxu0 %v4661_v37 }
 0x1c3   :  { %v879_v60 = vmax.f32 %v831_v44, 0.0  ;;  %v4668_v44 = vld [vmem:[#allocation10 + $0x30] ss:$12 sps:$4 sm:$0xff]  }
 0x1c4   :  { %v911_v49 = vpack.c.bf16 %v878_v47, %v875_v46  ;;  %v4676_v46 = vld [vmem:[#allocation10 + $0x64] ss:$12 sps:$4 sm:$0xff]   ;;  %v4674_v47 = vld [vmem:[#allocation10 + $0x60] ss:$12 sps:$4 sm:$0xff]  }
 0x1c5   :  { %v912_v51 = vpack.c.bf16 %v879_v60, %v876_v48  ;;  %v660_v52 = vpop.f32.mrb[20].mxu0  ;;  %1548 = vmatpush1.bf16.msra.mxu1 %v4657_v45  ;;  %4176 = vmatpush3.bf16.msra.mxu0 %v4661_v37  ;;  %v4673_v45 = vld [vmem:[#allocation10 + $0x4c] ss:$12 sps:$4 sm:$0xff]   ;;  %v4679_v48 = vld [vmem:[#allocation10 + $0x7c] ss:$12 sps:$4 sm:$0xff]  }
 0x1c6   :  { %v833_v54 = vadd.f32 %v5280_v38, %v660_v52  ;;  %v662_v55 = vpop.f32.mrb[21].mxu0  ;;  %v4682_v60 = vld [vmem:[#allocation10 + $0x94] ss:$12 sps:$4 sm:$0xff]   ;;  %v4688_v52 = vld [vmem:[#allocation10 + $0xc4] ss:$12 sps:$4 sm:$0xff]  }
 0x1c7   :  { %v834_v56 = vadd.f32 %v5284_v42, %v662_v55  ;;  %v664_v57 = vpop.f32.mrb[22].mxu0  ;;  %1492 = vmatprep.mubr.bf16.mxu1 %v912_v51  ;;  %1710 = vmatprep.mubr.bf16.mxu0 %v912_v51  ;;  %v4685_v51 = vld [vmem:[#allocation10 + $0xac] ss:$12 sps:$4 sm:$0xff]  }
 0x1c8   :  { %v836_v58 = vadd.f32 %v5280_v38, %v664_v57  ;;  %v666_v59 = vpop.f32.mrb[23].mxu0  ;;  %1493 = vmatmul.mubr.bf16.gmra.mrb[32].mxu1 %v911_v49  ;;  %1711 = vmatmul.mubr.bf16.gmra.mrb[48].mxu0 %v911_v49  ;;  %v881_v62 = vmax.f32 %v833_v54, 0.0  ;;  %v4680_v49 = vld [vmem:[#allocation10 + $0x90] ss:$12 sps:$4 sm:$0xff]   ;;  %v4689_v54 = vld [vmem:[#allocation10 + $0xc8] ss:$12 sps:$4 sm:$0xff]  }
 0x1c9   :  { %v837_v61 = vadd.f32 %v5284_v42, %v666_v59  ;;  %v882_v3 = vmax.f32 %v834_v56, 0.0  ;;  %v4686_v55 = vld [vmem:[#allocation10 + $0xc0] ss:$12 sps:$4 sm:$0xff]   ;;  %v4690_v56 = vld [vmem:[#allocation10 + $0x8] ss:$12 sps:$4 sm:$0xff]   ;;  %3924 = vmatprep.subr.bf16.mxu0 %v4689_v54 }
 0x1ca   :  { %v884_v0 = vmax.f32 %v836_v58, 0.0  ;;  %v4693_v57 = vld [vmem:[#allocation10 + $0xdc] ss:$12 sps:$4 sm:$0xff]   ;;  %v4694_v58 = vld [vmem:[#allocation10 + $0xe0] ss:$12 sps:$4 sm:$0xff]  }
 0x1cb   :  { %v885_v4 = vmax.f32 %v837_v61, 0.0  ;;  %v4695_v59 = vld [vmem:[#allocation10 + $0x20] ss:$12 sps:$4 sm:$0xff]  }
 0x1cc   :  { %v914_v5 = vpack.c.bf16 %v884_v0, %v881_v62  ;;  %v4698_v61 = vld [vmem:[#allocation10 + $0xf4] ss:$12 sps:$4 sm:$0xff]   ;;  %v4696_v62 = vld [vmem:[#allocation10 + $0xf0] ss:$12 sps:$4 sm:$0xff]   ;;  %v4700_v0 = vld [vmem:[#allocation10 + $0x38] ss:$12 sps:$4 sm:$0xff]  }
 0x1cd   :  { %v915_v6 = vpack.c.bf16 %v885_v4, %v882_v3  ;;  %v670_v7 = vpop.f32.mrb[24].mxu0  ;;  %v4701_v3 = vld [vmem:[#allocation10 + $0x108] ss:$12 sps:$4 sm:$0xff]   ;;  %v4703_v4 = vld [vmem:[#allocation10 + $0x10c] ss:$12 sps:$4 sm:$0xff]  }
 0x1ce   :  { %v839_v8 = vadd.f32 %v5280_v38, %v670_v7  ;;  %v672_v9 = vpop.f32.mrb[25].mxu0  ;;  %v4708_v7 = vld [vmem:[#allocation10 + $0x124] ss:$12 sps:$4 sm:$0xff]  }
 0x1cf   :  { %v840_v10 = vadd.f32 %v5284_v42, %v672_v9  ;;  %v674_v11 = vpop.f32.mrb[26].mxu0  ;;  %1502 = vmatprep.mubr.bf16.mxu1 %v915_v6  ;;  %1718 = vmatprep.mubr.bf16.mxu0 %v915_v6  ;;  %v4705_v6 = vld [vmem:[#allocation10 + $0x50] ss:$12 sps:$4 sm:$0xff]   ;;  %v4706_v9 = vld [vmem:[#allocation10 + $0x120] ss:$12 sps:$4 sm:$0xff]  }
 0x1d0   :  { %v842_v12 = vadd.f32 %v5280_v38, %v674_v11  ;;  %v676_v13 = vpop.f32.mrb[27].mxu0  ;;  %1503 = vmatmul.mubr.bf16.gmra.mrb[36].mxu1 %v914_v5  ;;  %1719 = vmatmul.mubr.bf16.gmra.mrb[52].mxu0 %v914_v5  ;;  %v887_v17 = vmax.f32 %v839_v8, 0.0  ;;  %v4704_v5 = vld [vmem:[#allocation10 + $0x110] ss:$12 sps:$4 sm:$0xff]   ;;  %v4709_v8 = vld [vmem:[#allocation10 + $0x128] ss:$12 sps:$4 sm:$0xff]  }
 0x1d1   :  { %v843_v14 = vadd.f32 %v5284_v42, %v676_v13  ;;  %v888_v19 = vmax.f32 %v840_v10, 0.0  ;;  %v4710_v10 = vld [vmem:[#allocation10 + $0x68] ss:$12 sps:$4 sm:$0xff]   ;;  %v4711_v11 = vld [vmem:[#allocation10 + $0x138] ss:$12 sps:$4 sm:$0xff]  }
 0x1d2   :  { %v890_v18 = vmax.f32 %v842_v12, 0.0  ;;  %v4713_v12 = vld [vmem:[#allocation10 + $0x13c] ss:$12 sps:$4 sm:$0xff]   ;;  %v4714_v13 = vld [vmem:[#allocation10 + $0x140] ss:$12 sps:$4 sm:$0xff]  }
 0x1d3   :  { %v891_v20 = vmax.f32 %v843_v14, 0.0  ;;  %v4715_v14 = vld [vmem:[#allocation10 + $0x80] ss:$12 sps:$4 sm:$0xff]  }
 0x1d4   :  { %v917_v21 = vpack.c.bf16 %v890_v18, %v887_v17  ;;  %v4718_v17 = vld [vmem:[#allocation10 + $0x154] ss:$12 sps:$4 sm:$0xff]   ;;  %v4719_v18 = vld [vmem:[#allocation10 + $0x158] ss:$12 sps:$4 sm:$0xff]  }
 0x1d5   :  { %v918_v22 = vpack.c.bf16 %v891_v20, %v888_v19  ;;  %v680_v24 = vpop.f32.mrb[28].mxu0  ;;  %v4716_v19 = vld [vmem:[#allocation10 + $0x150] ss:$12 sps:$4 sm:$0xff]   ;;  %v4720_v20 = vld [vmem:[#allocation10 + $0x98] ss:$12 sps:$4 sm:$0xff]  }
 0x1d6   :  { %v845_v25 = vadd.f32 %v5280_v38, %v680_v24  ;;  %v682_v2 = vpop.f32.mrb[29].mxu0  ;;  %v4721_v24 = vld [vmem:[#allocation10 + $0x168] ss:$12 sps:$4 sm:$0xff]  }
 0x1d7   :  { %v846_v27 = vadd.f32 %v5284_v42, %v682_v2  ;;  %v684_v28 = vpop.f32.mrb[30].mxu0  ;;  %1512 = vmatprep.mubr.bf16.mxu1 %v918_v22  ;;  %1726 = vmatprep.mubr.bf16.mxu0 %v918_v22  ;;  %v4724_v22 = vld [vmem:[#allocation10 + $0x170] ss:$12 sps:$4 sm:$0xff]  }
 0x1d8   :  { %v848_v33 = vadd.f32 %v5280_v38, %v684_v28  ;;  %v686_v34 = vpop.f32.mrb[31].mxu0  ;;  %1513 = vmatmul.mubr.bf16.gmra.mrb[40].mxu1 %v917_v21  ;;  %1727 = vmatmul.mubr.bf16.gmra.mrb[56].mxu0 %v917_v21  ;;  %v893_v36 = vmax.f32 %v845_v25, 0.0  ;;  %v4665_v38 = vld [vmem:[#allocation10 + $0x18] ss:$12 sps:$4 sm:$0xff]   ;;  %v4725_v25 = vld [vmem:[#allocation10 + $0xb0] ss:$12 sps:$4 sm:$0xff]  }
 0x1d9   :  { %v849_v35 = vadd.f32 %v5284_v42, %v686_v34  ;;  %v894_v39 = vmax.f32 %v846_v27, 0.0  ;;  %v4667_v42 = vld [vmem:[#allocation10 + $0x1c] ss:$12 sps:$4 sm:$0xff]   ;;  %v4723_v21 = vld [vmem:[#allocation10 + $0x16c] ss:$12 sps:$4 sm:$0xff]  }
 0x1da   :  { %v896_v37 = vmax.f32 %v848_v33, 0.0  ;;  %v4728_v2 = vld [vmem:[#allocation10 + $0x184] ss:$12 sps:$4 sm:$0xff]   ;;  %v5356_v27 = vld [vmem:[#allocation10 + $0x188] ss:$12 sps:$4 sm:$0xff]  }
 0x1db   :  { %v897_v40 = vmax.f32 %v849_v35, 0.0 }
 0x1dc   :  { %v920_v41 = vpack.c.bf16 %v896_v37, %v893_v36 }
 0x1dd   :  { %v921_v43 = vpack.c.bf16 %v897_v40, %v894_v39 }
 0x1df   :  { %1522 = vmatprep.mubr.bf16.mxu1 %v921_v43  ;;  %1734 = vmatprep.mubr.bf16.mxu0 %v921_v43 }
 0x1e0   :  { %1523 = vmatmul.mubr.bf16.gmra.mrb[44].mxu1 %v920_v41  ;;  %1735 = vmatmul.mubr.bf16.gmra.mrb[60].mxu0 %v920_v41 }
 0x1e1   :  { %4177 = vmatprep.mubr.bf16.mxu0 %v5263_v16  ;;  %1565 = vmatprep.mubr.bf16.mxu1 %v4965_v1 }
 0x1e8   :  { %1566 = vmatmul.mubr.bf16.vlgmr.msra.gmra.mrb[16].mxu1 %v5263_v16  ;;  %4178 = vmatmul.mubr.bf16.vlgmr.msra.gmra.mrb[64].mxu0 %v5261_v15  ;;  %v4662_v16 = vld [vmem:[#allocation10] ss:$12 sps:$4 sm:$0xff]  }
 0x1e9   :  { %4181 = vmatprep.mubr.bf16.mxu0 %v5275_v32  ;;  %1575 = vmatprep.mubr.bf16.mxu1 %v4965_v1 }
 0x1ea   :  { %3925 = vmatpush3.bf16.msra.mxu0 %v4690_v56 }
 0x1eb   :  { %3926 = vmatprep.subr.bf16.mxu0 %v4694_v58 }
 0x1ee   :  { %3927 = vmatpush3.bf16.msra.mxu0 %v4695_v59 }
 0x1f0   :  { %1576 = vmatmul.mubr.bf16.gmra.mrb[20].mxu1 %v5261_v15  ;;  %4182 = vmatmul.mubr.bf16.gmra.mrb[68].mxu0 %v5271_v30  ;;  %v4664_v15 = vld [vmem:[#allocation10 + $0x4] ss:$12 sps:$4 sm:$0xff]  }
 0x1f1   :  { %4185 = vmatprep.mubr.bf16.mxu0 %v5291_v53  ;;  %1585 = vmatprep.mubr.bf16.mxu1 %v4965_v1 }
 0x1f2   :  { %2409 = vmatprep.subr.bf16.mxu1 %v4664_v15 }
 0x1f3   :  { %2410 = vmatpush1.bf16.msra.mxu1 %v4662_v16 }
 0x1f4   :  { %2411 = vmatprep.subr.bf16.mxu1 %v4667_v42 }
 0x1f7   :  { %2412 = vmatpush1.bf16.msra.mxu1 %v4665_v38 }
 0x1f8   :  { %1586 = vmatmul.mubr.bf16.gmra.mrb[24].mxu1 %v5275_v32  ;;  %4186 = vmatmul.mubr.bf16.gmra.mrb[72].mxu0 %v5288_v50  ;;  %v4670_v32 = vld [vmem:[#allocation10 + $0x34] ss:$12 sps:$4 sm:$0xff]  }
 0x1f9   :  { %4189 = vmatprep.mubr.bf16.mxu0 %v5303_v26  ;;  %1595 = vmatprep.mubr.bf16.mxu1 %v4965_v1 }
 0x1fa   :  { %2413 = vmatprep.subr.bf16.mxu1 %v4670_v32 }
 0x1fb   :  { %2414 = vmatpush1.bf16.msra.mxu1 %v4668_v44 }
 0x1fc   :  { %2415 = vmatprep.subr.bf16.mxu1 %v4673_v45 }
 0x200   :  { %1596 = vmatmul.mubr.bf16.gmra.mrb[28].mxu1 %v5271_v30  ;;  %4190 = vmatmul.mubr.bf16.gmra.mrb[76].mxu0 %v5300_v23  ;;  %v4671_v30 = vld [vmem:[#allocation10 + $0x48] ss:$12 sps:$4 sm:$0xff]  }
 0x201   :  { %1605 = vmatprep.mubr.bf16.mxu1 %v4965_v1  ;;  %2416 = vmatpush1.bf16.msra.mxu1 %v4671_v30 }
 0x202   :  { %2417 = vmatprep.subr.bf16.mxu1 %v4676_v46 }
 0x205   :  { %2418 = vmatpush1.bf16.msra.mxu1 %v4674_v47 }
 0x206   :  { %2419 = vmatprep.subr.bf16.mxu1 %v4679_v48 }
 0x208   :  { %1606 = vmatmul.mubr.bf16.gmra.mrb[32].mxu1 %v5291_v53  ;;  %v4677_v53 = vld [vmem:[#allocation10 + $0x78] ss:$12 sps:$4 sm:$0xff]  }
 0x209   :  { %1615 = vmatprep.mubr.bf16.mxu1 %v4965_v1  ;;  %2420 = vmatpush1.bf16.msra.mxu1 %v4677_v53 }
 0x20a   :  { %2421 = vmatprep.subr.bf16.mxu1 %v4682_v60 }
 0x20d   :  { %2422 = vmatpush1.bf16.msra.mxu1 %v4680_v49 }
 0x20e   :  { %2423 = vmatprep.subr.bf16.mxu1 %v4685_v51 }
 0x210   :  { %1616 = vmatmul.mubr.bf16.gmra.mrb[36].mxu1 %v5288_v50  ;;  %v4683_v50 = vld [vmem:[#allocation10 + $0xa8] ss:$12 sps:$4 sm:$0xff]  }
 0x211   :  { %1625 = vmatprep.mubr.bf16.mxu1 %v4965_v1  ;;  %2424 = vmatpush1.bf16.msra.mxu1 %v4683_v50 }
 0x212   :  { %2425 = vmatprep.subr.bf16.mxu1 %v4688_v52 }
 0x215   :  { %2426 = vmatpush1.bf16.msra.mxu1 %v4686_v55 }
 0x216   :  { %2427 = vmatprep.subr.bf16.mxu1 %v4693_v57 }
 0x218   :  { %1626 = vmatmul.mubr.bf16.gmra.mrb[40].mxu1 %v5303_v26  ;;  %v4691_v26 = vld [vmem:[#allocation10 + $0xd8] ss:$12 sps:$4 sm:$0xff]  }
 0x219   :  { %1635 = vmatprep.mubr.bf16.mxu1 %v4965_v1  ;;  %2428 = vmatpush1.bf16.msra.mxu1 %v4691_v26 }
 0x21a   :  { %2429 = vmatprep.subr.bf16.mxu1 %v4698_v61 }
 0x21d   :  { %2430 = vmatpush1.bf16.msra.mxu1 %v4696_v62 }
 0x21e   :  { %2431 = vmatprep.subr.bf16.mxu1 %v4703_v4 }
 0x220   :  { %1636 = vmatmul.mubr.bf16.gmra.mrb[44].mxu1 %v5300_v23  ;;  %v4699_v23 = vld [vmem:[#allocation10 + $0xf8] ss:$12 sps:$4 sm:$0xff]  }
 0x221   :  { %3928 = vmatprep.subr.bf16.mxu0 %v4699_v23  ;;  %2432 = vmatpush1.bf16.msra.mxu1 %v4701_v3 }
 0x222   :  { %3929 = vmatpush3.bf16.msra.mxu0 %v4700_v0  ;;  %2433 = vmatprep.subr.bf16.mxu1 %v4708_v7 }
 0x223   :  { %3930 = vmatprep.subr.bf16.mxu0 %v4704_v5 }
 0x225   :  { %2434 = vmatpush1.bf16.msra.mxu1 %v4706_v9  ;;  %v1019_v9 = vld [vmem:[%s5641_s6] sm:$0x7] }
 0x226   :  { %3931 = vmatpush3.bf16.msra.mxu0 %v4705_v6  ;;  %2435 = vmatprep.subr.bf16.mxu1 %v4713_v12 }
 0x227   :  { %3932 = vmatprep.subr.bf16.mxu0 %v4709_v8 }
 0x229   :  { %2436 = vmatpush1.bf16.msra.mxu1 %v4711_v11 }
 0x22a   :  { %3933 = vmatpush3.bf16.msra.mxu0 %v4710_v10  ;;  %2437 = vmatprep.subr.bf16.mxu1 %v4718_v17  ;;  %v5388_v17 = vrot.slane %v1019_v9, %v5269_v29 }
 0x22b   :  { %3934 = vmatprep.subr.bf16.mxu0 %v4714_v13 }
 0x22d   :  { %2438 = vmatpush1.bf16.msra.mxu1 %v4716_v19 }
 0x22e   :  { %3935 = vmatpush3.bf16.msra.mxu0 %v4715_v14  ;;  %2439 = vmatprep.subr.bf16.mxu1 %v4723_v21  ;;  %v5385_v14 = vrot.slane %v1019_v9, %v5249_v63 }
 0x22f   :  { %3936 = vmatprep.subr.bf16.mxu0 %v4719_v18  ;;  %v5391_v18 = vrot.slane %v1019_v9, %v5273_v31 }
 0x231   :  { %2440 = vmatpush1.bf16.msra.mxu1 %v4721_v24 }
 0x232   :  { %3937 = vmatpush3.bf16.msra.mxu0 %v4720_v20  ;;  %2522 = vmatprep.subr.bf16.mxu1 %v4728_v2 }
 0x233   :  { %3938 = vmatprep.subr.bf16.mxu0 %v4724_v22 }
 0x236   :  { %3939 = vmatpush3.bf16.msra.mxu0 %v4725_v25 }
 0x237   :  { %4193 = vmatprep.subr.bf16.mxu0 %v5356_v27 }
 0x27b   :  { %v3860_v28 = vpop.f32.mrb[32].mxu0 }
 0x27c   :  { %v3861_v33 = vpop.f32.mrb[33].mxu0 }
 0x27d   :  { %v3862_v34 = vadd.f32 %v3861_v33, %v3860_v28  ;;  %v3863_v35 = vpop.f32.mrb[34].mxu0 }
 0x27e   :  { %v3864_v36 = vpop.f32.mrb[35].mxu0 }
 0x27f   :  { %v3865_v37 = vadd.f32 %v3864_v36, %v3863_v35  ;;  %v1681_v22 = vadd.f32 %v3862_v34, %v5385_v14 }
 0x283   :  { %v3866_v39 = vpop.f32.mrb[36].mxu0 }
 0x284   :  { %v3867_v40 = vpop.f32.mrb[37].mxu0 }
 0x285   :  { %v3868_v41 = vadd.f32 %v3867_v40, %v3866_v39  ;;  %v3869_v43 = vpop.f32.mrb[38].mxu0 }
 0x286   :  { %v3870_v15 = vpop.f32.mrb[39].mxu0 }
 0x287   :  { %v3871_v16 = vadd.f32 %v3870_v15, %v3869_v43  ;;  %v1689_v19 = vadd.f32 %v3868_v41, %v5385_v14  ;;  %v1684_v43 = vadd.f32 %v3865_v37, %v5385_v14 }
 0x289   :  { %v1692_v33 = vadd.f32 %v3871_v16, %v5385_v14 }
 0x28b   :  { %v3872_v38 = vpop.f32.mrb[40].mxu0 }
 0x28c   :  { %v3873_v42 = vpop.f32.mrb[41].mxu0 }
 0x28d   :  { %v5359_v32 = vadd.f32 %v3873_v42, %v3872_v38  ;;  %v3875_v44 = vpop.f32.mrb[42].mxu0 }
 0x28e   :  { %v3876_v30 = vpop.f32.mrb[43].mxu0 }
 0x28f   :  { %v5361_v45 = vadd.f32 %v3876_v30, %v3875_v44 }
 0x293   :  { %v3878_v46 = vpop.f32.mrb[44].mxu0 }
 0x294   :  { %v3879_v47 = vpop.f32.mrb[45].mxu0 }
 0x295   :  { %v3880_v53 = vadd.f32 %v3879_v47, %v3878_v46  ;;  %v3881_v48 = vpop.f32.mrb[46].mxu0 }
 0x296   :  { %v3882_v60 = vpop.f32.mrb[47].mxu0 }
 0x297   :  { %v5363_v49 = vadd.f32 %v3882_v60, %v3881_v48  ;;  %v1705_v37 = vadd.f32 %v3880_v53, %v5385_v14 }
 0x299   :  { %v1708_v9 = vadd.f32 %v5363_v49, %v5385_v14 }
 0x29b   :  { %v3884_v50 = vpop.f32.mrb[48].mxu0 }
 0x29c   :  { %v3885_v51 = vpop.f32.mrb[49].mxu0 }
 0x29d   :  { %v5365_v52 = vadd.f32 %v3885_v51, %v3884_v50  ;;  %v3887_v54 = vpop.f32.mrb[50].mxu0 }
 0x29e   :  { %v3888_v55 = vpop.f32.mrb[51].mxu0 }
 0x29f   :  { %v5367_v56 = vadd.f32 %v3888_v55, %v3887_v54 }
 0x2a3   :  { %v3890_v26 = vpop.f32.mrb[52].mxu0 }
 0x2a4   :  { %v3891_v57 = vpop.f32.mrb[53].mxu0 }
 0x2a5   :  { %v5369_v58 = vadd.f32 %v3891_v57, %v3890_v26  ;;  %v3893_v59 = vpop.f32.mrb[54].mxu0 }
 0x2a6   :  { %v3894_v61 = vpop.f32.mrb[55].mxu0 }
 0x2a7   :  { %v5371_v23 = vadd.f32 %v3894_v61, %v3893_v59 }
 0x2ab   :  { %v3896_v62 = vpop.f32.mrb[56].mxu0 }
 0x2ac   :  { %v3897_v0 = vpop.f32.mrb[57].mxu0 }
 0x2ad   :  { %v5373_v3 = vadd.f32 %v3897_v0, %v3896_v62  ;;  %v3899_v4 = vpop.f32.mrb[58].mxu0  ;;  %v1697_v62 = vadd.f32 %v5359_v32, %v5385_v14  ;;  %v4726_v0 = vld [vmem:[#allocation10 + $0x180] ss:$12 sps:$4 sm:$0xff]   ;;  %v1700_v32 = vadd.f32 %v5361_v45, %v5385_v14  ;;  %v4740_v45 = vld [vmem:[#allocation10 + $0x1b8] ss:$12 sps:$4 sm:$0xff]  }
 0x2ae   :  { %v3900_v5 = vpop.f32.mrb[59].mxu0 }
 0x2af   :  { %v5375_v6 = vadd.f32 %v3900_v5, %v3899_v4 }
 0x2b3   :  { %v3902_v7 = vpop.f32.mrb[60].mxu0 }
 0x2b4   :  { %v3903_v8 = vpop.f32.mrb[61].mxu0 }
 0x2b5   :  { %v5380_v10 = vadd.f32 %v3903_v8, %v3902_v7  ;;  %v3905_v11 = vpop.f32.mrb[62].mxu0 }
 0x2b6   :  { %v3906_v12 = vpop.f32.mrb[63].mxu0 }
 0x2b7   :  { %v5382_v13 = vadd.f32 %v3906_v12, %v3905_v11  ;;  %v4731_v11 = vld [vmem:[#allocation10 + $0x19c] ss:$12 sps:$4 sm:$0xff]   ;;  %v4736_v12 = vld [vmem:[#allocation10 + $0x1a0] ss:$12 sps:$4 sm:$0xff]  }
 0x2bb   :  { %v1567_v20 = vpop.f32.mrb[16].mxu1  ;;  %v4179_v21 = vpop.f32.mrb[64].mxu0 }
 0x2bc   :  { %v4348_v24 = vadd.f32 %v1567_v20, %v5388_v17  ;;  %v1786_v25 = vadd.f32 %v4179_v21, %v1689_v19  ;;  %v1569_v2 = vpop.f32.mrb[17].mxu1  ;;  %v1777_v28 = vpop.f32.mrb[65].mxu0 }
 0x2bd   :  { %v4349_v35 = vadd.f32 %v1569_v2, %v5391_v18  ;;  %v1778_v36 = vadd.f32 %v1777_v28, %v1681_v22  ;;  %v1571_v39 = vpop.f32.mrb[18].mxu1  ;;  %v4180_v40 = vpop.f32.mrb[66].mxu0 }
 0x2be   :  { %v4350_v41 = vadd.f32 %v1571_v39, %v5388_v17  ;;  %v1789_v15 = vadd.f32 %v4180_v40, %v1692_v33  ;;  %v1573_v38 = vpop.f32.mrb[19].mxu1  ;;  %v1780_v42 = vpop.f32.mrb[67].mxu0  ;;  %v1840_v30 = vmax.f32 %v4348_v24, 0.0  ;;  %v1848_v46 = vmax.f32 %v1786_v25, 0.0  ;;  %v4729_v33 = vld [vmem:[#allocation10 + $0x198] ss:$12 sps:$4 sm:$0xff]  }
 0x2bf   :  { %v4351_v34 = vadd.f32 %v1573_v38, %v5391_v18  ;;  %v1781_v44 = vadd.f32 %v1780_v42, %v1684_v43  ;;  %v1841_v16 = vmax.f32 %v4349_v35, 0.0  ;;  %v1842_v60 = vmax.f32 %v1778_v36, 0.0  ;;  %v4735_v35 = vld [vmem:[#allocation10 + $0x1b4] ss:$12 sps:$4 sm:$0xff]  }
 0x2c0   :  { %v1843_v47 = vmax.f32 %v4350_v41, 0.0  ;;  %v1851_v48 = vmax.f32 %v1789_v15, 0.0 }
 0x2c1   :  { %v1844_v50 = vmax.f32 %v4351_v34, 0.0  ;;  %v1845_v51 = vmax.f32 %v1781_v44, 0.0 }
 0x2c2   :  { %v1888_v54 = vpack.c.bf16 %v1843_v47, %v1840_v30  ;;  %v5401_v55 = vpack.c.bf16 %v1851_v48, %v1848_v46  ;;  %v1721_v30 = vadd.f32 %v5369_v58, %v5385_v14  ;;  %v4739_v58 = vld [vmem:[#allocation10 + $0x1cc] ss:$12 sps:$4 sm:$0xff]  }
 0x2c3   :  { %v1889_v26 = vpack.c.bf16 %v1844_v50, %v1841_v16  ;;  %v5404_v57 = vpack.c.bf16 %v1845_v51, %v1842_v60  ;;  %v1577_v59 = vpop.f32.mrb[20].mxu1  ;;  %v4183_v61 = vpop.f32.mrb[68].mxu0  ;;  %v1713_v16 = vadd.f32 %v5365_v52, %v5385_v14  ;;  %v4733_v60 = vld [vmem:[#allocation10 + $0x1b0] ss:$12 sps:$4 sm:$0xff]  }
 0x2c4   :  { %v4352_v4 = vadd.f32 %v1577_v59, %v5388_v17  ;;  %v1802_v5 = vadd.f32 %v4183_v61, %v1705_v37  ;;  %v1579_v7 = vpop.f32.mrb[21].mxu1  ;;  %v1793_v8 = vpop.f32.mrb[69].mxu0  ;;  %v4744_v59 = vld [vmem:[#allocation10 + $0x1d0] ss:$12 sps:$4 sm:$0xff]  }
 0x2c5   :  { %v4353_v53 = vadd.f32 %v1579_v7, %v5391_v18  ;;  %v1794_v19 = vadd.f32 %v1793_v8, %v1697_v62  ;;  %v1581_v20 = vpop.f32.mrb[22].mxu1  ;;  %v4184_v21 = vpop.f32.mrb[70].mxu0  ;;  %2441 = vmatprep.mubr.bf16.mxu1 %v1889_v26  ;;  %2667 = vmatprep.mubr.bf16.mxu0 %v1889_v26  ;;  %v1724_v26 = vadd.f32 %v5371_v23, %v5385_v14 }
 0x2c6   :  { %v4354_v22 = vadd.f32 %v1581_v20, %v5388_v17  ;;  %v1805_v24 = vadd.f32 %v4184_v21, %v1708_v9  ;;  %v1583_v25 = vpop.f32.mrb[23].mxu1  ;;  %v1796_v2 = vpop.f32.mrb[71].mxu0  ;;  %2442 = vmatmul.mubr.bf16.vlgmr.msra.gmra.mrb[48].mxu1 %v1888_v54  ;;  %2668 = vmatmul.mubr.bf16.vlgmr.msra.gmra.mrb[80].mxu0 %v1888_v54  ;;  %v1846_v36 = vmax.f32 %v4352_v4, 0.0  ;;  %v1860_v39 = vmax.f32 %v1802_v5, 0.0 }
 0x2c7   :  { %v4355_v49 = vadd.f32 %v1583_v25, %v5391_v18  ;;  %v1797_v28 = vadd.f32 %v1796_v2, %v1700_v32  ;;  %2523 = vmatpush1.bf16.msra.mxu1 %v4726_v0  ;;  %4194 = vmatpush3.bf16.msra.mxu0 %v5356_v27  ;;  %v1847_v41 = vmax.f32 %v4353_v53, 0.0  ;;  %v1854_v15 = vmax.f32 %v1794_v19, 0.0  ;;  %v4743_v53 = vld [vmem:[#allocation10 + $0x1e4] ss:$12 sps:$4 sm:$0xff]  }
 0x2c8   :  { %v1849_v40 = vmax.f32 %v4354_v22, 0.0  ;;  %v1863_v43 = vmax.f32 %v1805_v24, 0.0  ;;  %2524 = vmatprep.subr.bf16.mxu1 %v4731_v11  ;;  %4195 = vmatprep.subr.bf16.mxu0 %v4736_v12  ;;  %v1716_v4 = vadd.f32 %v5367_v56, %v5385_v14  ;;  %v4748_v56 = vld [vmem:[#allocation10 + $0x1e8] ss:$12 sps:$4 sm:$0xff]  }
 0x2c9   :  { %v1850_v38 = vmax.f32 %v4355_v49, 0.0  ;;  %v1857_v42 = vmax.f32 %v1797_v28, 0.0 }
 0x2ca   :  { %v1891_v34 = vpack.c.bf16 %v1849_v40, %v1846_v36  ;;  %v5417_v44 = vpack.c.bf16 %v1863_v43, %v1860_v39  ;;  %v1729_v43 = vadd.f32 %v5373_v3, %v5385_v14 }
 0x2cb   :  { %v1892_v46 = vpack.c.bf16 %v1850_v38, %v1847_v41  ;;  %v5421_v27 = vpack.c.bf16 %v1857_v42, %v1854_v15  ;;  %v1587_v47 = vpop.f32.mrb[24].mxu1  ;;  %v4187_v48 = vpop.f32.mrb[72].mxu0  ;;  %2525 = vmatpush1.bf16.msra.mxu1 %v4729_v33  ;;  %4196 = vmatpush3.bf16.msra.mxu0 %v4736_v12  ;;  %v4737_v12 = vld [vmem:[#allocation10 + $0x1c8] ss:$12 sps:$4 sm:$0xff]   ;;  %v1737_v33 = vadd.f32 %v5380_v10, %v5385_v14 }
 0x2cc   :  { %v4356_v50 = vadd.f32 %v1587_v47, %v5388_v17  ;;  %v1818_v51 = vadd.f32 %v4187_v48, %v1721_v30  ;;  %v1589_v54 = vpop.f32.mrb[25].mxu1  ;;  %v1809_v37 = vpop.f32.mrb[73].mxu0  ;;  %2526 = vmatprep.subr.bf16.mxu1 %v4735_v35  ;;  %4197 = vmatprep.subr.bf16.mxu0 %v4740_v45  ;;  %v4747_v10 = vld [vmem:[#allocation10 + $0x1fc] ss:$12 sps:$4 sm:$0xff]   ;;  %v4752_v30 = vld [vmem:[#allocation10 + $0x200] ss:$12 sps:$4 sm:$0xff]  }
 0x2cd   :  { %v4357_v61 = vadd.f32 %v1589_v54, %v5391_v18  ;;  %v1810_v62 = vadd.f32 %v1809_v37, %v1713_v16  ;;  %v1591_v0 = vpop.f32.mrb[26].mxu1  ;;  %v4188_v52 = vpop.f32.mrb[74].mxu0  ;;  %2451 = vmatprep.mubr.bf16.mxu1 %v1892_v46  ;;  %2675 = vmatprep.mubr.bf16.mxu0 %v1892_v46  ;;  %v1732_v16 = vadd.f32 %v5375_v6, %v5385_v14  ;;  %v4756_v6 = vld [vmem:[#allocation10 + $0x218] ss:$12 sps:$4 sm:$0xff]  }
 0x2ce   :  { %v4358_v5 = vadd.f32 %v1591_v0, %v5388_v17  ;;  %v1821_v7 = vadd.f32 %v4188_v52, %v1724_v26  ;;  %v1593_v8 = vpop.f32.mrb[27].mxu1  ;;  %v1812_v9 = vpop.f32.mrb[75].mxu0  ;;  %2452 = vmatmul.mubr.bf16.gmra.mrb[52].mxu1 %v1891_v34  ;;  %2676 = vmatmul.mubr.bf16.gmra.mrb[84].mxu0 %v1891_v34  ;;  %v1852_v19 = vmax.f32 %v4356_v50, 0.0  ;;  %v1872_v20 = vmax.f32 %v1818_v51, 0.0  ;;  %v4745_v26 = vld [vmem:[#allocation10 + $0x1f8] ss:$12 sps:$4 sm:$0xff]  }
 0x2cf   :  { %v4359_v23 = vadd.f32 %v1593_v8, %v5391_v18  ;;  %v1813_v11 = vadd.f32 %v1812_v9, %v1716_v4  ;;  %2527 = vmatpush1.bf16.msra.mxu1 %v4733_v60  ;;  %4198 = vmatpush3.bf16.msra.mxu0 %v4740_v45  ;;  %v1853_v22 = vmax.f32 %v4357_v61, 0.0  ;;  %v1866_v24 = vmax.f32 %v1810_v62, 0.0  ;;  %v4741_v45 = vld [vmem:[#allocation10 + $0x1e0] ss:$12 sps:$4 sm:$0xff]  }
 0x2d0   :  { %v1855_v21 = vmax.f32 %v4358_v5, 0.0  ;;  %v1875_v32 = vmax.f32 %v1821_v7, 0.0  ;;  %2528 = vmatprep.subr.bf16.mxu1 %v4739_v58  ;;  %4199 = vmatprep.subr.bf16.mxu0 %v4744_v59  ;;  %v1740_v34 = vadd.f32 %v5382_v13, %v5385_v14  ;;  %v4751_v58 = vld [vmem:[#allocation10 + $0x214] ss:$12 sps:$4 sm:$0xff]  }
 0x2d1   :  { %v1856_v25 = vmax.f32 %v4359_v23, 0.0  ;;  %v1869_v2 = vmax.f32 %v1813_v11, 0.0 }
 0x2d2   :  { %v1894_v49 = vpack.c.bf16 %v1855_v21, %v1852_v19  ;;  %v5433_v28 = vpack.c.bf16 %v1875_v32, %v1872_v20  ;;  %v4755_v20 = vld [vmem:[#allocation10 + $0x22c] ss:$12 sps:$4 sm:$0xff]   ;;  %v4757_v21 = vld [vmem:[#allocation10 + $0x230] ss:$12 sps:$4 sm:$0xff]  }
 0x2d3   :  { %v1895_v35 = vpack.c.bf16 %v1856_v25, %v1853_v22  ;;  %v5437_v36 = vpack.c.bf16 %v1869_v2, %v1866_v24  ;;  %v1597_v39 = vpop.f32.mrb[28].mxu1  ;;  %v4191_v40 = vpop.f32.mrb[76].mxu0  ;;  %2529 = vmatpush1.bf16.msra.mxu1 %v4737_v12  ;;  %4200 = vmatpush3.bf16.msra.mxu0 %v4744_v59  ;;  %v4749_v12 = vld [vmem:[#allocation10 + $0x210] ss:$12 sps:$4 sm:$0xff]   ;;  %v4753_v2 = vld [vmem:[#allocation10 + $0x228] ss:$12 sps:$4 sm:$0xff]  }
 0x2d4   :  { %v4360_v41 = vadd.f32 %v1597_v39, %v5388_v17  ;;  %v1834_v15 = vadd.f32 %v4191_v40, %v1737_v33  ;;  %v1599_v38 = vpop.f32.mrb[29].mxu1  ;;  %v1825_v42 = vpop.f32.mrb[77].mxu0  ;;  %2530 = vmatprep.subr.bf16.mxu1 %v4743_v53  ;;  %4201 = vmatprep.subr.bf16.mxu0 %v4748_v56 }
 0x2d5   :  { %v4361_v46 = vadd.f32 %v1599_v38, %v5391_v18  ;;  %v1826_v47 = vadd.f32 %v1825_v42, %v1729_v43  ;;  %v1601_v48 = vpop.f32.mrb[30].mxu1  ;;  %v4192_v3 = vpop.f32.mrb[78].mxu0  ;;  %2461 = vmatprep.mubr.bf16.mxu1 %v1895_v35  ;;  %2683 = vmatprep.mubr.bf16.mxu0 %v1895_v35 }
 0x2d6   :  { %v4362_v60 = vadd.f32 %v1601_v48, %v5388_v17  ;;  %v1837_v50 = vadd.f32 %v4192_v3, %v1740_v34  ;;  %v1603_v51 = vpop.f32.mrb[31].mxu1  ;;  %v1828_v54 = vpop.f32.mrb[79].mxu0  ;;  %2462 = vmatmul.mubr.bf16.gmra.mrb[56].mxu1 %v1894_v49  ;;  %2684 = vmatmul.mubr.bf16.gmra.mrb[88].mxu0 %v1894_v49  ;;  %v1858_v59 = vmax.f32 %v4360_v41, 0.0  ;;  %v1884_v61 = vmax.f32 %v1834_v15, 0.0 }
 0x2d7   :  { %v4363_v13 = vadd.f32 %v1603_v51, %v5391_v18  ;;  %v1829_v37 = vadd.f32 %v1828_v54, %v1732_v16  ;;  %2531 = vmatpush1.bf16.msra.mxu1 %v4741_v45  ;;  %4202 = vmatpush3.bf16.msra.mxu0 %v4748_v56  ;;  %v1859_v14 = vmax.f32 %v4361_v46, 0.0  ;;  %v1878_v52 = vmax.f32 %v1826_v47, 0.0 }
 0x2d8   :  { %v1861_v62 = vmax.f32 %v4362_v60, 0.0  ;;  %v1887_v0 = vmax.f32 %v1837_v50, 0.0  ;;  %2532 = vmatprep.subr.bf16.mxu1 %v4747_v10  ;;  %4203 = vmatprep.subr.bf16.mxu0 %v4752_v30 }
 0x2d9   :  { %v1862_v4 = vmax.f32 %v4363_v13, 0.0  ;;  %v1881_v5 = vmax.f32 %v1829_v37, 0.0 }
 0x2da   :  { %v1897_v7 = vpack.c.bf16 %v1861_v62, %v1858_v59  ;;  %v5449_v8 = vpack.c.bf16 %v1887_v0, %v1884_v61 }
 0x2db   :  { %v1898_v9 = vpack.c.bf16 %v1862_v4, %v1859_v14  ;;  %v5451_v23 = vpack.c.bf16 %v1881_v5, %v1878_v52  ;;  %v1607_v11 = vpop.f32.mrb[32].mxu1  ;;  %2533 = vmatpush1.bf16.msra.mxu1 %v4745_v26  ;;  %4204 = vmatpush3.bf16.msra.mxu0 %v4752_v30 }
 0x2dc   :  { %v4364_v53 = vadd.f32 %v1607_v11, %v5388_v17  ;;  %v1609_v19 = vpop.f32.mrb[33].mxu1  ;;  %2534 = vmatprep.subr.bf16.mxu1 %v4751_v58  ;;  %4205 = vmatprep.subr.bf16.mxu0 %v4756_v6 }
 0x2dd   :  { %v4365_v32 = vadd.f32 %v1609_v19, %v5391_v18  ;;  %v1611_v56 = vpop.f32.mrb[34].mxu1  ;;  %2471 = vmatprep.mubr.bf16.mxu1 %v1898_v9  ;;  %2691 = vmatprep.mubr.bf16.mxu0 %v1898_v9 }
 0x2de   :  { %v4366_v22 = vadd.f32 %v1611_v56, %v5388_v17  ;;  %v1613_v24 = vpop.f32.mrb[35].mxu1  ;;  %2472 = vmatmul.mubr.bf16.gmra.mrb[60].mxu1 %v1897_v7  ;;  %2692 = vmatmul.mubr.bf16.gmra.mrb[92].mxu0 %v1897_v7  ;;  %v1864_v49 = vmax.f32 %v4364_v53, 0.0 }
 0x2df   :  { %v4367_v25 = vadd.f32 %v1613_v24, %v5391_v18  ;;  %2535 = vmatpush1.bf16.msra.mxu1 %v4749_v12  ;;  %4206 = vmatpush3.bf16.msra.mxu0 %v4756_v6  ;;  %v1865_v35 = vmax.f32 %v4365_v32, 0.0 }
 0x2e0   :  { %v1867_v33 = vmax.f32 %v4366_v22, 0.0  ;;  %2536 = vmatprep.subr.bf16.mxu1 %v4755_v20  ;;  %4207 = vmatprep.subr.bf16.mxu0 %v4757_v21 }
 0x2e1   :  { %v1868_v39 = vmax.f32 %v4367_v25, 0.0  ;;  %v4768_v25 = vld [vmem:[#allocation11 + $0xa0] sm:$0xff]  }
 0x2e2   :  { %v1900_v40 = vpack.c.bf16 %v1867_v33, %v1864_v49  ;;  %v4771_v49 = vld [vmem:[#allocation11 + $0x60] sm:$0xff]  }
 0x2e3   :  { %v1901_v43 = vpack.c.bf16 %v1868_v39, %v1865_v35  ;;  %v1617_v45 = vpop.f32.mrb[36].mxu1  ;;  %2537 = vmatpush1.bf16.msra.mxu1 %v4753_v2  ;;  %4208 = vmatpush3.bf16.msra.mxu0 %v4757_v21  ;;  %v4769_v2 = vld [vmem:[#allocation11 + $0x58] sm:$0xff]   ;;  %v4772_v33 = vld [vmem:[#allocation11 + $0x20] sm:$0xff]   ;;  %v4773_v35 = vld [vmem:[#allocation11 + $0xa8] sm:$0xff]  }
 0x2e4   :  { %v4368_v41 = vadd.f32 %v1617_v45, %v5388_v17  ;;  %v1619_v15 = vpop.f32.mrb[37].mxu1  ;;  %v4774_v39 = vld [vmem:[#allocation11 + $0x68] sm:$0xff]   ;;  %v4777_v45 = vld [vmem:[#allocation11 + $0xb0] sm:$0xff]  }
 0x2e5   :  { %v4369_v38 = vadd.f32 %v1619_v15, %v5391_v18  ;;  %v1621_v42 = vpop.f32.mrb[38].mxu1  ;;  %2481 = vmatprep.mubr.bf16.mxu1 %v1901_v43  ;;  %2699 = vmatprep.mubr.bf16.mxu0 %v1901_v43  ;;  %v4776_v43 = vld [vmem:[#allocation11 + $0x70] sm:$0xff]   ;;  %v4779_v15 = vld [vmem:[#allocation11 + $0x78] sm:$0xff]  }
 0x2e6   :  { %v4370_v34 = vadd.f32 %v1621_v42, %v5388_v17  ;;  %v1623_v10 = vpop.f32.mrb[39].mxu1  ;;  %2482 = vmatmul.mubr.bf16.gmra.mrb[64].mxu1 %v1900_v40  ;;  %2700 = vmatmul.mubr.bf16.gmra.mrb[96].mxu0 %v1900_v40  ;;  %v1870_v46 = vmax.f32 %v4368_v41, 0.0  ;;  %v4775_v40 = vld [vmem:[#allocation11 + $0x28] sm:$0xff]   ;;  %v4778_v41 = vld [vmem:[#allocation11 + $0x30] sm:$0xff]   ;;  %v4781_v42 = vld [vmem:[#allocation11 + $0x38] sm:$0xff]  }
 0x2e7   :  { %v4371_v30 = vadd.f32 %v1623_v10, %v5391_v18  ;;  %v1871_v48 = vmax.f32 %v4369_v38, 0.0  ;;  %v4780_v38 = vld [vmem:[#allocation11 + $0xb8] sm:$0xff]  }
 0x2e8   :  { %v1873_v47 = vmax.f32 %v4370_v34, 0.0 }
 0x2e9   :  { %v1874_v3 = vmax.f32 %v4371_v30, 0.0 }
 0x2ea   :  { %v1903_v16 = vpack.c.bf16 %v1873_v47, %v1870_v46 }
 0x2eb   :  { %v1904_v60 = vpack.c.bf16 %v1874_v3, %v1871_v48  ;;  %v1627_v50 = vpop.f32.mrb[40].mxu1  ;;  %v5493_v48 = vld [vmem:[#allocation13] sm:$0xff]  }
 0x2ec   :  { %v4372_v51 = vadd.f32 %v1627_v50, %v5388_v17  ;;  %v1629_v54 = vpop.f32.mrb[41].mxu1 }
 0x2ed   :  { %v4373_v13 = vadd.f32 %v1629_v54, %v5391_v18  ;;  %v1631_v37 = vpop.f32.mrb[42].mxu1  ;;  %2491 = vmatprep.mubr.bf16.mxu1 %v1904_v60  ;;  %2707 = vmatprep.mubr.bf16.mxu0 %v1904_v60 }
 0x2ee   :  { %v4374_v26 = vadd.f32 %v1631_v37, %v5388_v17  ;;  %v1633_v58 = vpop.f32.mrb[43].mxu1  ;;  %2492 = vmatmul.mubr.bf16.gmra.mrb[68].mxu1 %v1903_v16  ;;  %2708 = vmatmul.mubr.bf16.gmra.mrb[100].mxu0 %v1903_v16  ;;  %v1876_v61 = vmax.f32 %v4372_v51, 0.0 }
 0x2ef   :  { %v4375_v59 = vadd.f32 %v1633_v58, %v5391_v18  ;;  %v1877_v0 = vmax.f32 %v4373_v13, 0.0 }
 0x2f0   :  { %v1879_v62 = vmax.f32 %v4374_v26, 0.0 }
 0x2f1   :  { %v1880_v6 = vmax.f32 %v4375_v59, 0.0 }
 0x2f2   :  { %v1906_v14 = vpack.c.bf16 %v1879_v62, %v1876_v61 }
 0x2f3   :  { %v1907_v52 = vpack.c.bf16 %v1880_v6, %v1877_v0  ;;  %v1637_v4 = vpop.f32.mrb[44].mxu1 }
 0x2f4   :  { %v4376_v5 = vadd.f32 %v1637_v4, %v5388_v17  ;;  %v1639_v7 = vpop.f32.mrb[45].mxu1 }
 0x2f5   :  { %v4377_v9 = vadd.f32 %v1639_v7, %v5391_v18  ;;  %v1641_v11 = vpop.f32.mrb[46].mxu1  ;;  %2501 = vmatprep.mubr.bf16.mxu1 %v1907_v52  ;;  %2715 = vmatprep.mubr.bf16.mxu0 %v1907_v52 }
 0x2f6   :  { %v4378_v12 = vadd.f32 %v1641_v11, %v5388_v17  ;;  %v1643_v53 = vpop.f32.mrb[47].mxu1  ;;  %2502 = vmatmul.mubr.bf16.gmra.mrb[72].mxu1 %v1906_v14  ;;  %2716 = vmatmul.mubr.bf16.gmra.mrb[104].mxu0 %v1906_v14  ;;  %v1882_v20 = vmax.f32 %v4376_v5, 0.0  ;;  %v4758_v17 = vld [vmem:[#allocation11 + $0x80] sm:$0xff]  }
 0x2f7   :  { %v4379_v19 = vadd.f32 %v1643_v53, %v5391_v18  ;;  %v1883_v32 = vmax.f32 %v4377_v9, 0.0  ;;  %4225 = vmatprep.subr.bf16.mxu1 %v4758_v17  ;;  %v4759_v18 = vld [vmem:[#allocation11 + $0x88] sm:$0xff]  }
 0x2f8   :  { %v1885_v21 = vmax.f32 %v4378_v12, 0.0 }
 0x2f9   :  { %v1886_v56 = vmax.f32 %v4379_v19, 0.0 }
 0x2fa   :  { %v1909_v22 = vpack.c.bf16 %v1885_v21, %v1882_v20 }
 0x2fb   :  { %v1910_v24 = vpack.c.bf16 %v1886_v56, %v1883_v32 }
 0x2fd   :  { %2511 = vmatprep.mubr.bf16.mxu1 %v1910_v24  ;;  %2723 = vmatprep.mubr.bf16.mxu0 %v1910_v24 }
 0x2fe   :  { %2512 = vmatmul.mubr.bf16.gmra.mrb[76].mxu1 %v1909_v22  ;;  %2724 = vmatmul.mubr.bf16.gmra.mrb[108].mxu0 %v1909_v22 }
 0x2ff   :  { %4209 = vmatprep.mubr.bf16.mxu0 %v5404_v57  ;;  %2554 = vmatprep.mubr.bf16.mxu1 %v4965_v1 }
 0x306   :  { %2555 = vmatmul.mubr.bf16.vlgmr.msra.gmra.mrb[48].mxu1 %v5404_v57  ;;  %4210 = vmatmul.mubr.bf16.vlgmr.msra.gmra.mrb[112].mxu0 %v5401_v55  ;;  %v4761_v57 = vld [vmem:[#allocation11 + $0x40] sm:$0xff]  }
 0x307   :  { %4213 = vmatprep.mubr.bf16.mxu0 %v5421_v27  ;;  %2564 = vmatprep.mubr.bf16.mxu1 %v4965_v1 }
 0x308   :  { %4226 = vmatpush3.bf16.msra.mxu1 %v4758_v17  ;;  %4004 = vmatprep.subr.bf16.mxu0 %v4761_v57 }
 0x309   :  { %4227 = vmatprep.subr.bf16.mxu1 %v4759_v18 }
 0x30c   :  { %4228 = vmatpush3.bf16.msra.mxu1 %v4759_v18 }
 0x30e   :  { %2565 = vmatmul.mubr.bf16.gmra.mrb[52].mxu1 %v5401_v55  ;;  %4214 = vmatmul.mubr.bf16.gmra.mrb[116].mxu0 %v5417_v44  ;;  %v4760_v55 = vld [vmem:[#allocation11 + $0x90] sm:$0xff]  }
 0x30f   :  { %4217 = vmatprep.mubr.bf16.mxu0 %v5437_v36  ;;  %2574 = vmatprep.mubr.bf16.mxu1 %v4965_v1 }
 0x310   :  { %4229 = vmatprep.subr.bf16.mxu1 %v4760_v55 }
 0x311   :  { %4230 = vmatpush3.bf16.msra.mxu1 %v4760_v55 }
 0x316   :  { %2575 = vmatmul.mubr.bf16.gmra.mrb[56].mxu1 %v5421_v27  ;;  %4218 = vmatmul.mubr.bf16.gmra.mrb[120].mxu0 %v5433_v28  ;;  %v4763_v27 = vld [vmem:[#allocation11 + $0x98] sm:$0xff]  }
 0x317   :  { %4221 = vmatprep.mubr.bf16.mxu0 %v5451_v23  ;;  %2584 = vmatprep.mubr.bf16.mxu1 %v4965_v1 }
 0x318   :  { %4231 = vmatprep.subr.bf16.mxu1 %v4763_v27 }
 0x319   :  { %4232 = vmatpush3.bf16.msra.mxu1 %v4763_v27 }
 0x31a   :  { %4233 = vmatprep.subr.bf16.mxu1 %v4768_v25 }
 0x31d   :  { %4234 = vmatpush3.bf16.msra.mxu1 %v4768_v25 }
 0x31e   :  { %2585 = vmatmul.mubr.bf16.gmra.mrb[60].mxu1 %v5417_v44  ;;  %4222 = vmatmul.mubr.bf16.gmra.mrb[124].mxu0 %v5449_v8  ;;  %v4762_v44 = vld [vmem:[#allocation11] sm:$0xff]  }
 0x31f   :  { %2594 = vmatprep.mubr.bf16.mxu1 %v4965_v1  ;;  %4005 = vmatpush3.bf16.msra.mxu0 %v4762_v44 }
 0x320   :  { %4235 = vmatprep.subr.bf16.mxu1 %v4773_v35 }
 0x321   :  { %4236 = vmatpush3.bf16.msra.mxu1 %v4773_v35 }
 0x322   :  { %4237 = vmatprep.subr.bf16.mxu1 %v4777_v45 }
 0x325   :  { %4238 = vmatpush3.bf16.msra.mxu1 %v4777_v45 }
 0x326   :  { %2595 = vmatmul.mubr.bf16.gmra.mrb[64].mxu1 %v5437_v36  ;;  %v4765_v36 = vld [vmem:[#allocation11 + $0x8] sm:$0xff]   ;;  %4239 = vmatprep.subr.bf16.mxu1 %v4780_v38 }
 0x327   :  { %2604 = vmatprep.mubr.bf16.mxu1 %v4965_v1 }
 0x329   :  { %4240 = vmatpush3.bf16.msra.mxu1 %v4780_v38 }
 0x32e   :  { %2605 = vmatmul.mubr.bf16.gmra.mrb[68].mxu1 %v5433_v28  ;;  %v4764_v28 = vld [vmem:[#allocation11 + $0x48] sm:$0xff]  }
 0x32f   :  { %2614 = vmatprep.mubr.bf16.mxu1 %v4965_v1  ;;  %4006 = vmatprep.subr.bf16.mxu0 %v4764_v28 }
 0x330   :  { %4007 = vmatpush3.bf16.msra.mxu0 %v4765_v36 }
 0x336   :  { %2615 = vmatmul.mubr.bf16.gmra.mrb[72].mxu1 %v5451_v23  ;;  %v4766_v23 = vld [vmem:[#allocation11 + $0x50] sm:$0xff]  }
 0x337   :  { %2624 = vmatprep.mubr.bf16.mxu1 %v4965_v1  ;;  %v4767_v1 = vld [vmem:[#allocation11 + $0x10] sm:$0xff]   ;;  %4008 = vmatprep.subr.bf16.mxu0 %v4766_v23 }
 0x338   :  { %4009 = vmatpush3.bf16.msra.mxu0 %v4767_v1  ;;  %v2008_v23 = vld [vmem:[%s5643_s8] sm:$0x7] }
 0x339   :  { %4010 = vmatprep.subr.bf16.mxu0 %v4769_v2  ;;  %v5528_v35 = vrot.slane %v2008_v23, %v5273_v31 }
 0x33e   :  { %2625 = vmatmul.mubr.bf16.gmra.mrb[76].mxu1 %v5449_v8  ;;  %v4770_v8 = vld [vmem:[#allocation11 + $0x18] sm:$0xff]  }
 0x33f   :  { %4011 = vmatpush3.bf16.msra.mxu0 %v4770_v8 }
 0x340   :  { %4012 = vmatprep.subr.bf16.mxu0 %v4771_v49  ;;  %v5522_v49 = vrot.slane %v2008_v23, %v5249_v63 }
 0x343   :  { %4013 = vmatpush3.bf16.msra.mxu0 %v4772_v33  ;;  %v5525_v33 = vrot.slane %v2008_v23, %v5269_v29 }
 0x344   :  { %4014 = vmatprep.subr.bf16.mxu0 %v4774_v39 }
 0x347   :  { %4015 = vmatpush3.bf16.msra.mxu0 %v4775_v40 }
 0x348   :  { %4016 = vmatprep.subr.bf16.mxu0 %v4776_v43 }
 0x34b   :  { %4017 = vmatpush3.bf16.msra.mxu0 %v4778_v41 }
 0x34c   :  { %4018 = vmatprep.subr.bf16.mxu0 %v4779_v15 }
 0x34f   :  { %4019 = vmatpush3.bf16.msra.mxu0 %v4781_v42 }
 0x350   :  { %4257 = vmatprep.subr.bf16.mxu0 %v5493_v48 }
 0x399   :  { %v3940_v34 = vpop.f32.mrb[80].mxu0 }
 0x39a   :  { %v3941_v10 = vpop.f32.mrb[81].mxu0 }
 0x39b   :  { %v3942_v30 = vadd.f32 %v3941_v10, %v3940_v34  ;;  %v3943_v46 = vpop.f32.mrb[82].mxu0 }
 0x39c   :  { %v3944_v47 = vpop.f32.mrb[83].mxu0 }
 0x39d   :  { %v3945_v3 = vadd.f32 %v3944_v47, %v3943_v46  ;;  %v2670_v45 = vadd.f32 %v3942_v30, %v5522_v49 }
 0x39f   :  { %v2673_v31 = vadd.f32 %v3945_v3, %v5522_v49 }
 0x3a1   :  { %v3946_v16 = vpop.f32.mrb[84].mxu0 }
 0x3a2   :  { %v3947_v60 = vpop.f32.mrb[85].mxu0 }
 0x3a3   :  { %v3948_v50 = vadd.f32 %v3947_v60, %v3946_v16  ;;  %v3949_v51 = vpop.f32.mrb[86].mxu0 }
 0x3a4   :  { %v3950_v54 = vpop.f32.mrb[87].mxu0 }
 0x3a5   :  { %v3951_v13 = vadd.f32 %v3950_v54, %v3949_v51  ;;  %v2678_v39 = vadd.f32 %v3948_v50, %v5522_v49 }
 0x3a7   :  { %v2681_v63 = vadd.f32 %v3951_v13, %v5522_v49 }
 0x3a9   :  { %v3952_v37 = vpop.f32.mrb[88].mxu0 }
 0x3aa   :  { %v3953_v26 = vpop.f32.mrb[89].mxu0 }
 0x3ab   :  { %v5496_v58 = vadd.f32 %v3953_v26, %v3952_v37  ;;  %v3955_v59 = vpop.f32.mrb[90].mxu0 }
 0x3ac   :  { %v3956_v61 = vpop.f32.mrb[91].mxu0 }
 0x3ad   :  { %v5498_v62 = vadd.f32 %v3956_v61, %v3955_v59 }
 0x3b1   :  { %v3958_v0 = vpop.f32.mrb[92].mxu0 }
 0x3b2   :  { %v3959_v6 = vpop.f32.mrb[93].mxu0 }
 0x3b3   :  { %v3960_v14 = vadd.f32 %v3959_v6, %v3958_v0  ;;  %v3961_v52 = vpop.f32.mrb[94].mxu0 }
 0x3b4   :  { %v3962_v4 = vpop.f32.mrb[95].mxu0 }
 0x3b5   :  { %v5500_v5 = vadd.f32 %v3962_v4, %v3961_v52  ;;  %v2694_v3 = vadd.f32 %v3960_v14, %v5522_v49 }
 0x3b9   :  { %v3964_v7 = vpop.f32.mrb[96].mxu0 }
 0x3ba   :  { %v3965_v9 = vpop.f32.mrb[97].mxu0 }
 0x3bb   :  { %v5502_v11 = vadd.f32 %v3965_v9, %v3964_v7  ;;  %v3967_v12 = vpop.f32.mrb[98].mxu0 }
 0x3bc   :  { %v3968_v53 = vpop.f32.mrb[99].mxu0 }
 0x3bd   :  { %v5504_v19 = vadd.f32 %v3968_v53, %v3967_v12 }
 0x3c1   :  { %v3970_v20 = vpop.f32.mrb[100].mxu0 }
 0x3c2   :  { %v3971_v21 = vpop.f32.mrb[101].mxu0 }
 0x3c3   :  { %v5506_v32 = vadd.f32 %v3971_v21, %v3970_v20  ;;  %v3973_v56 = vpop.f32.mrb[102].mxu0  ;;  %v2686_v21 = vadd.f32 %v5496_v58, %v5522_v49 }
 0x3c4   :  { %v3974_v22 = vpop.f32.mrb[103].mxu0 }
 0x3c5   :  { %v5508_v24 = vadd.f32 %v3974_v22, %v3973_v56 }
 0x3c9   :  { %v3976_v17 = vpop.f32.mrb[104].mxu0 }
 0x3ca   :  { %v3977_v18 = vpop.f32.mrb[105].mxu0 }
 0x3cb   :  { %v5510_v55 = vadd.f32 %v3977_v18, %v3976_v17  ;;  %v3979_v57 = vpop.f32.mrb[106].mxu0 }
 0x3cc   :  { %v3980_v44 = vpop.f32.mrb[107].mxu0 }
 0x3cd   :  { %v5512_v27 = vadd.f32 %v3980_v44, %v3979_v57  ;;  %v2697_v57 = vadd.f32 %v5500_v5, %v5522_v49  ;;  %v4783_v44 = vld [vmem:[#allocation13 + $0x8] sm:$0xff]  }
 0x3d1   :  { %v3982_v28 = vpop.f32.mrb[108].mxu0 }
 0x3d2   :  { %v3983_v36 = vpop.f32.mrb[109].mxu0 }
 0x3d3   :  { %v5517_v1 = vadd.f32 %v3983_v36, %v3982_v28  ;;  %v3985_v25 = vpop.f32.mrb[110].mxu0 }
 0x3d4   :  { %v3986_v2 = vpop.f32.mrb[111].mxu0 }
 0x3d5   :  { %v5519_v8 = vadd.f32 %v3986_v2, %v3985_v25  ;;  %v2689_v25 = vadd.f32 %v5498_v62, %v5522_v49 }
 0x3d9   :  { %v2556_v40 = vpop.f32.mrb[48].mxu1  ;;  %v4211_v43 = vpop.f32.mrb[112].mxu0 }
 0x3da   :  { %v4380_v41 = vadd.f32 %v2556_v40, %v5525_v33  ;;  %v2775_v15 = vadd.f32 %v4211_v43, %v2678_v39  ;;  %v2558_v38 = vpop.f32.mrb[49].mxu1  ;;  %v2766_v42 = vpop.f32.mrb[113].mxu0 }
 0x3db   :  { %v4381_v34 = vadd.f32 %v2558_v38, %v5528_v35  ;;  %v2767_v10 = vadd.f32 %v2766_v42, %v2670_v45  ;;  %v2560_v46 = vpop.f32.mrb[50].mxu1  ;;  %v4212_v47 = vpop.f32.mrb[114].mxu0  ;;  %v4784_v42 = vld [vmem:[#allocation13 + $0x10] sm:$0xff]  }
 0x3dc   :  { %v4382_v16 = vadd.f32 %v2560_v46, %v5525_v33  ;;  %v2778_v60 = vadd.f32 %v4212_v47, %v2681_v63  ;;  %v2562_v50 = vpop.f32.mrb[51].mxu1  ;;  %v2769_v51 = vpop.f32.mrb[115].mxu0  ;;  %v2829_v37 = vmax.f32 %v4380_v41, 0.0  ;;  %v2837_v26 = vmax.f32 %v2775_v15, 0.0 }
 0x3dd   :  { %v4383_v30 = vadd.f32 %v2562_v50, %v5528_v35  ;;  %v2770_v54 = vadd.f32 %v2769_v51, %v2673_v31  ;;  %v2830_v13 = vmax.f32 %v4381_v34, 0.0  ;;  %v2831_v0 = vmax.f32 %v2767_v10, 0.0 }
 0x3de   :  { %v2832_v59 = vmax.f32 %v4382_v16, 0.0  ;;  %v2840_v61 = vmax.f32 %v2778_v60, 0.0  ;;  %v2710_v31 = vadd.f32 %v5506_v32, %v5522_v49 }
 0x3df   :  { %v2833_v6 = vmax.f32 %v4383_v30, 0.0  ;;  %v2834_v52 = vmax.f32 %v2770_v54, 0.0 }
 0x3e0   :  { %v2877_v4 = vpack.c.bf16 %v2832_v59, %v2829_v37  ;;  %v2882_v7 = vpack.c.bf16 %v2840_v61, %v2837_v26  ;;  %v2713_v59 = vadd.f32 %v5508_v24, %v5522_v49  ;;  %v4785_v61 = vld [vmem:[#allocation13 + $0x18] sm:$0xff]  }
 0x3e1   :  { %v2878_v9 = vpack.c.bf16 %v2833_v6, %v2830_v13  ;;  %v2879_v12 = vpack.c.bf16 %v2834_v52, %v2831_v0  ;;  %v2566_v53 = vpop.f32.mrb[52].mxu1  ;;  %v4215_v20 = vpop.f32.mrb[116].mxu0 }
 0x3e2   :  { %v4384_v56 = vadd.f32 %v2566_v53, %v5525_v33  ;;  %v2791_v22 = vadd.f32 %v4215_v20, %v2694_v3  ;;  %v2568_v17 = vpop.f32.mrb[53].mxu1  ;;  %v2782_v18 = vpop.f32.mrb[117].mxu0 }
 0x3e3   :  { %v4385_v28 = vadd.f32 %v2568_v17, %v5528_v35  ;;  %v2783_v36 = vadd.f32 %v2782_v18, %v2686_v21  ;;  %v2570_v14 = vpop.f32.mrb[54].mxu1  ;;  %v4216_v23 = vpop.f32.mrb[118].mxu0  ;;  %3132 = vmatprep.mubr.bf16.mxu0 %v2878_v9  ;;  %4241 = vmatprep.mubr.bf16.mxu1 %v2879_v12 }
 0x3e4   :  { %v4386_v58 = vadd.f32 %v2570_v14, %v5525_v33  ;;  %v2794_v2 = vadd.f32 %v4216_v23, %v2697_v57  ;;  %v2572_v39 = vpop.f32.mrb[55].mxu1  ;;  %v2785_v40 = vpop.f32.mrb[119].mxu0  ;;  %3133 = vmatmul.mubr.bf16.vlgmr.msra.gmra.mrb[128].mxu0 %v2877_v4  ;;  %4242 = vmatmul.mubr.bf16.vlgmr.msra.gmra.mrb[80].mxu1 %v2882_v7  ;;  %v2835_v45 = vmax.f32 %v4384_v56, 0.0  ;;  %v2849_v41 = vmax.f32 %v2791_v22, 0.0  ;;  %v4786_v56 = vld [vmem:[#allocation13 + $0x20] sm:$0xff]  }
 0x3e5   :  { %v4387_v5 = vadd.f32 %v2572_v39, %v5528_v35  ;;  %v2786_v43 = vadd.f32 %v2785_v40, %v2689_v25  ;;  %4258 = vmatpush3.bf16.msra.mxu0 %v5493_v48  ;;  %v2836_v63 = vmax.f32 %v4385_v28, 0.0  ;;  %v2843_v62 = vmax.f32 %v2783_v36, 0.0 }
 0x3e6   :  { %v2838_v15 = vmax.f32 %v4386_v58, 0.0  ;;  %v2852_v38 = vmax.f32 %v2794_v2, 0.0  ;;  %4259 = vmatprep.subr.bf16.mxu0 %v4783_v44  ;;  %v2702_v48 = vadd.f32 %v5502_v11, %v5522_v49  ;;  %v2705_v11 = vadd.f32 %v5504_v19, %v5522_v49 }
 0x3e7   :  { %v2839_v34 = vmax.f32 %v4387_v5, 0.0  ;;  %v2846_v10 = vmax.f32 %v2786_v43, 0.0  ;;  %v2726_v28 = vadd.f32 %v5517_v1, %v5522_v49  ;;  %v2718_v58 = vadd.f32 %v5510_v55, %v5522_v49 }
 0x3e8   :  { %v2880_v46 = vpack.c.bf16 %v2838_v15, %v2835_v45  ;;  %v2888_v47 = vpack.c.bf16 %v2852_v38, %v2849_v41  ;;  %v2729_v43 = vadd.f32 %v5519_v8, %v5522_v49  ;;  %v4787_v45 = vld [vmem:[#allocation13 + $0x28] sm:$0xff]   ;;  %v2721_v55 = vadd.f32 %v5512_v27, %v5522_v49 }
 0x3e9   :  { %v2881_v16 = vpack.c.bf16 %v2839_v34, %v2836_v63  ;;  %v2885_v60 = vpack.c.bf16 %v2846_v10, %v2843_v62  ;;  %v2576_v50 = vpop.f32.mrb[56].mxu1  ;;  %v4219_v51 = vpop.f32.mrb[120].mxu0  ;;  %4260 = vmatpush3.bf16.msra.mxu0 %v4783_v44 }
 0x3ea   :  { %v4388_v30 = vadd.f32 %v2576_v50, %v5525_v33  ;;  %v2807_v54 = vadd.f32 %v4219_v51, %v2710_v31  ;;  %v2578_v37 = vpop.f32.mrb[57].mxu1  ;;  %v2798_v26 = vpop.f32.mrb[121].mxu0  ;;  %4261 = vmatprep.subr.bf16.mxu0 %v4784_v42 }
 0x3eb   :  { %v4389_v32 = vadd.f32 %v2578_v37, %v5528_v35  ;;  %v2799_v13 = vadd.f32 %v2798_v26, %v2702_v48  ;;  %v2580_v0 = vpop.f32.mrb[58].mxu1  ;;  %v4220_v6 = vpop.f32.mrb[122].mxu0  ;;  %3140 = vmatprep.mubr.bf16.mxu0 %v2881_v16  ;;  %4245 = vmatprep.mubr.bf16.mxu1 %v2885_v60 }
 0x3ec   :  { %v4390_v52 = vadd.f32 %v2580_v0, %v5525_v33  ;;  %v2810_v4 = vadd.f32 %v4220_v6, %v2713_v59  ;;  %v2582_v7 = vpop.f32.mrb[59].mxu1  ;;  %v2801_v3 = vpop.f32.mrb[123].mxu0  ;;  %3141 = vmatmul.mubr.bf16.gmra.mrb[132].mxu0 %v2880_v46  ;;  %4246 = vmatmul.mubr.bf16.gmra.mrb[84].mxu1 %v2888_v47  ;;  %v2841_v12 = vmax.f32 %v4388_v30, 0.0  ;;  %v2861_v53 = vmax.f32 %v2807_v54, 0.0 }
 0x3ed   :  { %v4391_v24 = vadd.f32 %v2582_v7, %v5528_v35  ;;  %v2802_v9 = vadd.f32 %v2801_v3, %v2705_v11  ;;  %4262 = vmatpush3.bf16.msra.mxu0 %v4784_v42  ;;  %v2842_v22 = vmax.f32 %v4389_v32, 0.0  ;;  %v2855_v17 = vmax.f32 %v2799_v13, 0.0 }
 0x3ee   :  { %v2844_v20 = vmax.f32 %v4390_v52, 0.0  ;;  %v2864_v21 = vmax.f32 %v2810_v4, 0.0  ;;  %4263 = vmatprep.subr.bf16.mxu0 %v4785_v61 }
 0x3ef   :  { %v2845_v19 = vmax.f32 %v4391_v24, 0.0  ;;  %v2858_v18 = vmax.f32 %v2802_v9, 0.0 }
 0x3f0   :  { %v2883_v57 = vpack.c.bf16 %v2844_v20, %v2841_v12  ;;  %v2894_v44 = vpack.c.bf16 %v2864_v21, %v2861_v53 }
 0x3f1   :  { %v2884_v36 = vpack.c.bf16 %v2845_v19, %v2842_v22  ;;  %v2891_v14 = vpack.c.bf16 %v2858_v18, %v2855_v17  ;;  %v2586_v23 = vpop.f32.mrb[60].mxu1  ;;  %v4223_v25 = vpop.f32.mrb[124].mxu0  ;;  %4264 = vmatpush3.bf16.msra.mxu0 %v4785_v61 }
 0x3f2   :  { %v4392_v2 = vadd.f32 %v2586_v23, %v5525_v33  ;;  %v2823_v39 = vadd.f32 %v4223_v25, %v2726_v28  ;;  %v2588_v40 = vpop.f32.mrb[61].mxu1  ;;  %v2814_v5 = vpop.f32.mrb[125].mxu0  ;;  %4265 = vmatprep.subr.bf16.mxu0 %v4786_v56 }
 0x3f3   :  { %v4393_v1 = vadd.f32 %v2588_v40, %v5528_v35  ;;  %v2815_v41 = vadd.f32 %v2814_v5, %v2718_v58  ;;  %v2590_v15 = vpop.f32.mrb[62].mxu1  ;;  %v4224_v38 = vpop.f32.mrb[126].mxu0  ;;  %3148 = vmatprep.mubr.bf16.mxu0 %v2884_v36  ;;  %4249 = vmatprep.mubr.bf16.mxu1 %v2891_v14 }
 0x3f4   :  { %v4394_v42 = vadd.f32 %v2590_v15, %v5525_v33  ;;  %v2826_v63 = vadd.f32 %v4224_v38, %v2729_v43  ;;  %v2592_v62 = vpop.f32.mrb[63].mxu1  ;;  %v2817_v34 = vpop.f32.mrb[127].mxu0  ;;  %3149 = vmatmul.mubr.bf16.gmra.mrb[136].mxu0 %v2883_v57  ;;  %4250 = vmatmul.mubr.bf16.gmra.mrb[88].mxu1 %v2894_v44  ;;  %v2847_v46 = vmax.f32 %v4392_v2, 0.0  ;;  %v2873_v47 = vmax.f32 %v2823_v39, 0.0 }
 0x3f5   :  { %v4395_v8 = vadd.f32 %v2592_v62, %v5528_v35  ;;  %v2818_v10 = vadd.f32 %v2817_v34, %v2721_v55  ;;  %4266 = vmatpush3.bf16.msra.mxu0 %v4786_v56  ;;  %v2848_v60 = vmax.f32 %v4393_v1, 0.0  ;;  %v2867_v50 = vmax.f32 %v2815_v41, 0.0 }
 0x3f6   :  { %v2850_v31 = vmax.f32 %v4394_v42, 0.0  ;;  %v2876_v16 = vmax.f32 %v2826_v63, 0.0  ;;  %4267 = vmatprep.subr.bf16.mxu0 %v4787_v45 }
 0x3f7   :  { %v2851_v51 = vmax.f32 %v4395_v8, 0.0  ;;  %v2870_v27 = vmax.f32 %v2818_v10, 0.0 }
 0x3f8   :  { %v2886_v49 = vpack.c.bf16 %v2850_v31, %v2847_v46  ;;  %v2900_v48 = vpack.c.bf16 %v2876_v16, %v2873_v47 }
 0x3f9   :  { %v2887_v30 = vpack.c.bf16 %v2851_v51, %v2848_v60  ;;  %v2897_v54 = vpack.c.bf16 %v2870_v27, %v2867_v50  ;;  %v2596_v37 = vpop.f32.mrb[64].mxu1  ;;  %4268 = vmatpush3.bf16.msra.mxu0 %v4787_v45  ;;  %v4788_v27 = vld [vmem:[#allocation13 + $0x30] sm:$0xff]  }
 0x3fa   :  { %v4396_v26 = vadd.f32 %v2596_v37, %v5525_v33  ;;  %v2598_v59 = vpop.f32.mrb[65].mxu1  ;;  %4269 = vmatprep.subr.bf16.mxu0 %v4788_v27 }
 0x3fb   :  { %v4397_v61 = vadd.f32 %v2598_v59, %v5528_v35  ;;  %v2600_v32 = vpop.f32.mrb[66].mxu1  ;;  %3156 = vmatprep.mubr.bf16.mxu0 %v2887_v30  ;;  %4253 = vmatprep.mubr.bf16.mxu1 %v2897_v54 }
 0x3fc   :  { %v4398_v13 = vadd.f32 %v2600_v32, %v5525_v33  ;;  %v2602_v0 = vpop.f32.mrb[67].mxu1  ;;  %3157 = vmatmul.mubr.bf16.gmra.mrb[140].mxu0 %v2886_v49  ;;  %4254 = vmatmul.mubr.bf16.gmra.mrb[92].mxu1 %v2900_v48  ;;  %v2853_v11 = vmax.f32 %v4396_v26, 0.0  ;;  %v4789_v49 = vld [vmem:[#allocation13 + $0x38] sm:$0xff]  }
 0x3fd   :  { %v4399_v6 = vadd.f32 %v2602_v0, %v5528_v35  ;;  %v2854_v4 = vmax.f32 %v4397_v61, 0.0  ;;  %4270 = vmatpush3.bf16.msra.mxu0 %v4788_v27 }
 0x3fe   :  { %v2856_v52 = vmax.f32 %v4398_v13, 0.0  ;;  %4271 = vmatprep.subr.bf16.mxu0 %v4789_v49 }
 0x3ff   :  { %v2857_v7 = vmax.f32 %v4399_v6, 0.0 }
 0x400   :  { %v2889_v3 = vpack.c.bf16 %v2856_v52, %v2853_v11 }
 0x401   :  { %v2890_v24 = vpack.c.bf16 %v2857_v7, %v2854_v4  ;;  %v2606_v9 = vpop.f32.mrb[68].mxu1  ;;  %4272 = vmatpush3.bf16.msra.mxu0 %v4789_v49 }
 0x402   :  { %v4400_v12 = vadd.f32 %v2606_v9, %v5525_v33  ;;  %v2608_v53 = vpop.f32.mrb[69].mxu1 }
 0x403   :  { %v4401_v20 = vadd.f32 %v2608_v53, %v5528_v35  ;;  %v2610_v21 = vpop.f32.mrb[70].mxu1  ;;  %3164 = vmatprep.mubr.bf16.mxu0 %v2890_v24 }
 0x404   :  { %v4402_v56 = vadd.f32 %v2610_v21, %v5525_v33  ;;  %v2612_v22 = vpop.f32.mrb[71].mxu1  ;;  %3165 = vmatmul.mubr.bf16.gmra.mrb[144].mxu0 %v2889_v3  ;;  %v2859_v19 = vmax.f32 %v4400_v12, 0.0 }
 0x405   :  { %v4403_v17 = vadd.f32 %v2612_v22, %v5528_v35  ;;  %v2860_v57 = vmax.f32 %v4401_v20, 0.0 }
 0x406   :  { %v2862_v18 = vmax.f32 %v4402_v56, 0.0 }
 0x407   :  { %v2863_v44 = vmax.f32 %v4403_v17, 0.0 }
 0x408   :  { %v2892_v28 = vpack.c.bf16 %v2862_v18, %v2859_v19 }
 0x409   :  { %v2893_v36 = vpack.c.bf16 %v2863_v44, %v2860_v57  ;;  %v2616_v14 = vpop.f32.mrb[72].mxu1 }
 0x40a   :  { %v4404_v23 = vadd.f32 %v2616_v14, %v5525_v33  ;;  %v2618_v25 = vpop.f32.mrb[73].mxu1 }
 0x40b   :  { %v4405_v58 = vadd.f32 %v2618_v25, %v5528_v35  ;;  %v2620_v2 = vpop.f32.mrb[74].mxu1  ;;  %3172 = vmatprep.mubr.bf16.mxu0 %v2893_v36 }
 0x40c   :  { %v4406_v39 = vadd.f32 %v2620_v2, %v5525_v33  ;;  %v2622_v40 = vpop.f32.mrb[75].mxu1  ;;  %3173 = vmatmul.mubr.bf16.gmra.mrb[148].mxu0 %v2892_v28  ;;  %v2865_v43 = vmax.f32 %v4404_v23, 0.0 }
 0x40d   :  { %v4407_v5 = vadd.f32 %v2622_v40, %v5528_v35  ;;  %v2866_v1 = vmax.f32 %v4405_v58, 0.0 }
 0x40e   :  { %v2868_v45 = vmax.f32 %v4406_v39, 0.0 }
 0x40f   :  { %v2869_v41 = vmax.f32 %v4407_v5, 0.0 }
 0x410   :  { %v2895_v15 = vpack.c.bf16 %v2868_v45, %v2865_v43 }
 0x411   :  { %v2896_v38 = vpack.c.bf16 %v2869_v41, %v2866_v1  ;;  %v2626_v55 = vpop.f32.mrb[76].mxu1 }
 0x412   :  { %v4408_v42 = vadd.f32 %v2626_v55, %v5525_v33  ;;  %v2628_v63 = vpop.f32.mrb[77].mxu1 }
 0x413   :  { %v4409_v62 = vadd.f32 %v2628_v63, %v5528_v35  ;;  %v2630_v34 = vpop.f32.mrb[78].mxu1  ;;  %3180 = vmatprep.mubr.bf16.mxu0 %v2896_v38 }
 0x414   :  { %v4410_v8 = vadd.f32 %v2630_v34, %v5525_v33  ;;  %v2632_v10 = vpop.f32.mrb[79].mxu1  ;;  %3181 = vmatmul.mubr.bf16.gmra.mrb[152].mxu0 %v2895_v15  ;;  %v2871_v47 = vmax.f32 %v4408_v42, 0.0 }
 0x415   :  { %v4411_v46 = vadd.f32 %v2632_v10, %v5528_v35  ;;  %v2872_v16 = vmax.f32 %v4409_v62, 0.0  ;;  %v5593_v35 = vld [vmem:[%s5645_s10] ss:$0 sm:$0xff] }
 0x416   :  { %v2874_v31 = vmax.f32 %v4410_v8, 0.0 }
 0x417   :  { %v2875_v60 = vmax.f32 %v4411_v46, 0.0 }
 0x418   :  { %v2898_v50 = vpack.c.bf16 %v2874_v31, %v2871_v47 }
 0x419   :  { %v2899_v51 = vpack.c.bf16 %v2875_v60, %v2872_v16 }
 0x41b   :  { %3188 = vmatprep.mubr.bf16.mxu0 %v2899_v51 }
 0x41c   :  { %3189 = vmatmul.mubr.bf16.gmra.mrb[156].mxu0 %v2898_v50 }
 0x4b7   :  { %v4020_v48 = vpop.f32.mrb[128].mxu0  ;;  %v4243_v33 = vpop.f32.mrb[80].mxu1 }
 0x4b8   :  { %v4021_v30 = vpop.f32.mrb[129].mxu0  ;;  %v3231_v54 = vpop.f32.mrb[81].mxu1 }
 0x4b9   :  { %v4022_v37 = vadd.f32 %v4021_v30, %v4020_v48  ;;  %v4023_v26 = vpop.f32.mrb[130].mxu0  ;;  %v4244_v59 = vpop.f32.mrb[82].mxu1 }
 0x4ba   :  { %v4024_v61 = vpop.f32.mrb[131].mxu0  ;;  %v3234_v32 = vpop.f32.mrb[83].mxu1 }
 0x4bb   :  { %v3135_v13 = vadd.f32 %v4022_v37, %v5593_v35  ;;  %v4025_v0 = vadd.f32 %v4024_v61, %v4023_v26 }
 0x4bd   :  { %v3232_v6 = vadd.f32 %v3231_v54, %v3135_v13  ;;  %v3138_v11 = vadd.f32 %v4025_v0, %v5593_v35 }
 0x4bf   :  { %v3235_v52 = vadd.f32 %v3234_v32, %v3138_v11  ;;  %v4026_v4 = vpop.f32.mrb[132].mxu0  ;;  %v4247_v7 = vpop.f32.mrb[84].mxu1  ;;  %v3294_v9 = vmax.f32 %v3232_v6, 0.0 }
 0x4c0   :  { %v4027_v3 = vpop.f32.mrb[133].mxu0  ;;  %v3247_v24 = vpop.f32.mrb[85].mxu1 }
 0x4c1   :  { %v3295_v12 = vmax.f32 %v3235_v52, 0.0  ;;  %v4028_v53 = vadd.f32 %v4027_v3, %v4026_v4  ;;  %v4029_v20 = vpop.f32.mrb[134].mxu0  ;;  %v4248_v21 = vpop.f32.mrb[86].mxu1 }
 0x4c2   :  { %v4030_v56 = vpop.f32.mrb[135].mxu0  ;;  %v3250_v22 = vpop.f32.mrb[87].mxu1 }
 0x4c3   :  { %v3310_v17 = vpack.c.bf16 %v3295_v12, %v3294_v9  ;;  %v3143_v19 = vadd.f32 %v4028_v53, %v5593_v35  ;;  %v4031_v18 = vadd.f32 %v4030_v56, %v4029_v20 }
 0x4c5   :  { %v3240_v57 = vadd.f32 %v4243_v33, %v3143_v19  ;;  %v3146_v44 = vadd.f32 %v4031_v18, %v5593_v35  ;;  %4273 = vmatprep.mubr.bf16.mxu0 %v3310_v17 }
 0x4c7   :  { %v3243_v28 = vadd.f32 %v4244_v59, %v3146_v44  ;;  %v4032_v36 = vpop.f32.mrb[136].mxu0  ;;  %v4251_v14 = vpop.f32.mrb[88].mxu1  ;;  %v3296_v58 = vmax.f32 %v3240_v57, 0.0 }
 0x4c8   :  { %v4033_v23 = vpop.f32.mrb[137].mxu0  ;;  %v3263_v25 = vpop.f32.mrb[89].mxu1 }
 0x4c9   :  { %v3297_v2 = vmax.f32 %v3243_v28, 0.0  ;;  %v4034_v39 = vadd.f32 %v4033_v23, %v4032_v36  ;;  %v4035_v40 = vpop.f32.mrb[138].mxu0  ;;  %v4252_v5 = vpop.f32.mrb[90].mxu1 }
 0x4ca   :  { %v4036_v43 = vpop.f32.mrb[139].mxu0  ;;  %v3266_v45 = vpop.f32.mrb[91].mxu1 }
 0x4cb   :  { %v3311_v1 = vpack.c.bf16 %v3297_v2, %v3296_v58  ;;  %v3151_v41 = vadd.f32 %v4034_v39, %v5593_v35  ;;  %v4037_v15 = vadd.f32 %v4036_v43, %v4035_v40 }
 0x4cd   :  { %v3248_v38 = vadd.f32 %v3247_v24, %v3151_v41  ;;  %v3154_v55 = vadd.f32 %v4037_v15, %v5593_v35  ;;  %4274 = vmatmul.mubr.bf16.vlgmr.msra.gmra.mrb[160].mxu0 %v3311_v1 }
 0x4cf   :  { %v3251_v42 = vadd.f32 %v3250_v22, %v3154_v55  ;;  %v4038_v63 = vpop.f32.mrb[140].mxu0  ;;  %v5601_v62 = vpop.f32.mrb[92].mxu1  ;;  %v3298_v10 = vmax.f32 %v3248_v38, 0.0 }
 0x4d0   :  { %v4039_v34 = vpop.f32.mrb[141].mxu0  ;;  %v3279_v8 = vpop.f32.mrb[93].mxu1 }
 0x4d1   :  { %v3299_v46 = vmax.f32 %v3251_v42, 0.0  ;;  %v4040_v47 = vadd.f32 %v4039_v34, %v4038_v63  ;;  %v4041_v31 = vpop.f32.mrb[142].mxu0  ;;  %v5603_v16 = vpop.f32.mrb[94].mxu1 }
 0x4d2   :  { %v4042_v60 = vpop.f32.mrb[143].mxu0  ;;  %v3282_v50 = vpop.f32.mrb[95].mxu1 }
 0x4d3   :  { %v3159_v51 = vadd.f32 %v4040_v47, %v5593_v35  ;;  %v4043_v27 = vadd.f32 %v4042_v60, %v4041_v31  ;;  %v3312_v49 = vpack.c.bf16 %v3299_v46, %v3298_v10 }
 0x4d5   :  { %v3256_v48 = vadd.f32 %v4247_v7, %v3159_v51  ;;  %v3162_v33 = vadd.f32 %v4043_v27, %v5593_v35  ;;  %4277 = vmatprep.mubr.bf16.mxu0 %v3312_v49  ;;  %v4966_v27 = vmov 0.0|0.0   ;;  %v4968_v49 = vmov 0.0  }
 0x4d6   :  { %4324 = vmatprep.subr.bf16.mxu1 %v4966_v27  ;;  %4321 = vmatprep.mubr.msk.f32.mxu1 %vm4967_vm4, %v4968_v49 }
 0x4d7   :  { %v3259_v30 = vadd.f32 %v4248_v21, %v3162_v33  ;;  %v4044_v54 = vpop.f32.mrb[144].mxu0  ;;  %v3300_v26 = vmax.f32 %v3256_v48, 0.0  ;;  %v3503_v48 = vld [vmem:[#allocation2] sm:$0x1] }
 0x4d8   :  { %v4045_v37 = vpop.f32.mrb[145].mxu0  ;;  %3506 = vperm.xlu0 %4543, %v3503_v48  }
 0x4d9   :  { %v3301_v59 = vmax.f32 %v3259_v30, 0.0  ;;  %v4046_v61 = vadd.f32 %v4045_v37, %v4044_v54  ;;  %v4047_v32 = vpop.f32.mrb[146].mxu0 }
 0x4da   :  { %v4048_v13 = vpop.f32.mrb[147].mxu0 }
 0x4db   :  { %v3167_v0 = vadd.f32 %v4046_v61, %v5593_v35  ;;  %v4049_v6 = vadd.f32 %v4048_v13, %v4047_v32  ;;  %v3313_v11 = vpack.c.bf16 %v3301_v59, %v3300_v26 }
 0x4dd   :  { %v3264_v52 = vadd.f32 %v3263_v25, %v3167_v0  ;;  %v3170_v4 = vadd.f32 %v4049_v6, %v5593_v35  ;;  %4278 = vmatmul.mubr.bf16.gmra.mrb[164].mxu0 %v3313_v11 }
 0x4df   :  { %v3267_v7 = vadd.f32 %v3266_v45, %v3170_v4  ;;  %v4050_v3 = vpop.f32.mrb[148].mxu0  ;;  %v3302_v9 = vmax.f32 %v3264_v52, 0.0 }
 0x4e0   :  { %v4051_v24 = vpop.f32.mrb[149].mxu0 }
 0x4e1   :  { %v3303_v12 = vmax.f32 %v3267_v7, 0.0  ;;  %v4052_v53 = vadd.f32 %v4051_v24, %v4050_v3  ;;  %v4053_v20 = vpop.f32.mrb[150].mxu0 }
 0x4e2   :  { %v4054_v21 = vpop.f32.mrb[151].mxu0 }
 0x4e3   :  { %v3175_v56 = vadd.f32 %v4052_v53, %v5593_v35  ;;  %v4055_v22 = vadd.f32 %v4054_v21, %v4053_v20  ;;  %v3314_v17 = vpack.c.bf16 %v3303_v12, %v3302_v9 }
 0x4e5   :  { %v3272_v19 = vadd.f32 %v4251_v14, %v3175_v56  ;;  %v3178_v18 = vadd.f32 %v4055_v22, %v5593_v35  ;;  %4281 = vmatprep.mubr.bf16.mxu0 %v3314_v17 }
 0x4e7   :  { %v3275_v57 = vadd.f32 %v4252_v5, %v3178_v18  ;;  %v4056_v44 = vpop.f32.mrb[152].mxu0  ;;  %v3304_v36 = vmax.f32 %v3272_v19, 0.0 }
 0x4e8   :  { %v4057_v28 = vpop.f32.mrb[153].mxu0 }
 0x4e9   :  { %v3305_v23 = vmax.f32 %v3275_v57, 0.0  ;;  %v4058_v25 = vadd.f32 %v4057_v28, %v4056_v44  ;;  %v4059_v58 = vpop.f32.mrb[154].mxu0 }
 0x4ea   :  { %v4060_v2 = vpop.f32.mrb[155].mxu0 }
 0x4eb   :  { %v3183_v39 = vadd.f32 %v4058_v25, %v5593_v35  ;;  %v4061_v40 = vadd.f32 %v4060_v2, %v4059_v58  ;;  %v3315_v43 = vpack.c.bf16 %v3305_v23, %v3304_v36 }
 0x4ed   :  { %v3280_v45 = vadd.f32 %v3279_v8, %v3183_v39  ;;  %v3186_v1 = vadd.f32 %v4061_v40, %v5593_v35  ;;  %4282 = vmatmul.mubr.bf16.gmra.mrb[168].mxu0 %v3315_v43 }
 0x4ef   :  { %v3283_v14 = vadd.f32 %v3282_v50, %v3186_v1  ;;  %v4062_v41 = vpop.f32.mrb[156].mxu0  ;;  %v3306_v38 = vmax.f32 %v3280_v45, 0.0 }
 0x4f0   :  { %v4063_v15 = vpop.f32.mrb[157].mxu0 }
 0x4f1   :  { %v3307_v5 = vmax.f32 %v3283_v14, 0.0  ;;  %v4064_v55 = vadd.f32 %v4063_v15, %v4062_v41  ;;  %v4065_v42 = vpop.f32.mrb[158].mxu0 }
 0x4f2   :  { %v4066_v63 = vpop.f32.mrb[159].mxu0 }
 0x4f3   :  { %v3191_v34 = vadd.f32 %v4064_v55, %v5593_v35  ;;  %v4067_v10 = vadd.f32 %v4066_v63, %v4065_v42  ;;  %v3316_v46 = vpack.c.bf16 %v3307_v5, %v3306_v38 }
 0x4f5   :  { %v3288_v47 = vadd.f32 %v5601_v62, %v3191_v34  ;;  %v3194_v31 = vadd.f32 %v4067_v10, %v5593_v35  ;;  %4285 = vmatprep.mubr.bf16.mxu0 %v3316_v46  ;;  %v3813_v62 = vld [vmem:[%s5647_s12] ss:$0 sm:$0xff] }
 0x4f7   :  { %v3291_v8 = vadd.f32 %v5603_v16, %v3194_v31  ;;  %v3308_v60 = vmax.f32 %v3288_v47, 0.0 }
 0x4f9   :  { %v3309_v50 = vmax.f32 %v3291_v8, 0.0 }
 0x4fb   :  { %v3317_v51 = vpack.c.bf16 %v3309_v50, %v3308_v60  ;;  %v3502_v60 = vld [vmem:[%s5648_s13] sm:$0x1] }
 0x4fd   :  { %4286 = vmatmul.mubr.bf16.gmra.mrb[172].mxu0 %v3317_v51 }
 0x557   :  { %v3507_v50 = vpop.permute.xlu0 %3506 }
 0x558   :  { %v3512_v51 = vrot.slane %v3507_v50, %v5269_v29 }
 0x5a0   :  { %v4275_v35 = vpop.f32.mrb[160].mxu0 }
 0x5a1   :  { %v3432_v33 = vadd.f32 %v4275_v35, %v3813_v62  ;;  %v3423_v30 = vpop.f32.mrb[161].mxu0 }
 0x5a2   :  { %v3424_v16 = vadd.f32 %v3813_v62, %v3423_v30  ;;  %v4276_v54 = vpop.f32.mrb[162].mxu0 }
 0x5a3   :  { %v3435_v37 = vadd.f32 %v4276_v54, %v3813_v62  ;;  %v3426_v26 = vpop.f32.mrb[163].mxu0  ;;  %v3488_v61 = vmax.f32 %v3432_v33, 0.0 }
 0x5a4   :  { %v3427_v59 = vadd.f32 %v3813_v62, %v3426_v26  ;;  %v3486_v13 = vmax.f32 %v3424_v16, 0.0 }
 0x5a5   :  { %v3489_v32 = vmax.f32 %v3435_v37, 0.0 }
 0x5a6   :  { %v3487_v0 = vmax.f32 %v3427_v59, 0.0 }
 0x5a7   :  { %v4328_v6 = vpack.c.bf16 %v3489_v32, %v3488_v61 }
 0x5a8   :  { %v4325_v11 = vpack.c.bf16 %v3487_v0, %v3486_v13 }
 0x5aa   :  { %4326 = vmatpush3.bf16.xpose.msra.mxu1 %v4325_v11 }
 0x5ab   :  { %4327 = vmatprep.subr.bf16.mxu1 %v4966_v27 }
 0x5b0   :  { %v4279_v52 = vpop.f32.mrb[164].mxu0 }
 0x5b1   :  { %v3448_v4 = vadd.f32 %v4279_v52, %v3813_v62  ;;  %v3439_v7 = vpop.f32.mrb[165].mxu0 }
 0x5b2   :  { %v3440_v3 = vadd.f32 %v3813_v62, %v3439_v7  ;;  %v4280_v24 = vpop.f32.mrb[166].mxu0  ;;  %4329 = vmatpush3.bf16.xpose.msra.mxu1 %v4328_v6 }
 0x5b3   :  { %v3451_v9 = vadd.f32 %v4280_v24, %v3813_v62  ;;  %v3442_v12 = vpop.f32.mrb[167].mxu0  ;;  %4330 = vmatprep.subr.bf16.mxu1 %v4966_v27  ;;  %v3492_v20 = vmax.f32 %v3448_v4, 0.0 }
 0x5b4   :  { %v3443_v53 = vadd.f32 %v3813_v62, %v3442_v12  ;;  %v3490_v56 = vmax.f32 %v3440_v3, 0.0 }
 0x5b5   :  { %v3493_v21 = vmax.f32 %v3451_v9, 0.0 }
 0x5b6   :  { %v3491_v22 = vmax.f32 %v3443_v53, 0.0 }
 0x5b7   :  { %v4334_v17 = vpack.c.bf16 %v3493_v21, %v3492_v20 }
 0x5b8   :  { %v4331_v19 = vpack.c.bf16 %v3491_v22, %v3490_v56 }
 0x5ba   :  { %4332 = vmatpush3.bf16.xpose.msra.mxu1 %v4331_v19 }
 0x5bb   :  { %4333 = vmatprep.subr.bf16.mxu1 %v4966_v27 }
 0x5c0   :  { %v4283_v18 = vpop.f32.mrb[168].mxu0 }
 0x5c1   :  { %v3464_v57 = vadd.f32 %v4283_v18, %v3813_v62  ;;  %v3455_v44 = vpop.f32.mrb[169].mxu0 }
 0x5c2   :  { %v3456_v28 = vadd.f32 %v3813_v62, %v3455_v44  ;;  %v4284_v36 = vpop.f32.mrb[170].mxu0  ;;  %4335 = vmatpush3.bf16.xpose.msra.mxu1 %v4334_v17 }
 0x5c3   :  { %v3467_v23 = vadd.f32 %v4284_v36, %v3813_v62  ;;  %v3458_v25 = vpop.f32.mrb[171].mxu0  ;;  %4336 = vmatprep.subr.bf16.mxu1 %v4966_v27  ;;  %v3496_v2 = vmax.f32 %v3464_v57, 0.0 }
 0x5c4   :  { %v3459_v58 = vadd.f32 %v3813_v62, %v3458_v25  ;;  %v3494_v40 = vmax.f32 %v3456_v28, 0.0 }
 0x5c5   :  { %v3497_v39 = vmax.f32 %v3467_v23, 0.0 }
 0x5c6   :  { %v3495_v43 = vmax.f32 %v3459_v58, 0.0 }
 0x5c7   :  { %v4340_v45 = vpack.c.bf16 %v3497_v39, %v3496_v2 }
 0x5c8   :  { %v4337_v1 = vpack.c.bf16 %v3495_v43, %v3494_v40 }
 0x5ca   :  { %4338 = vmatpush3.bf16.xpose.msra.mxu1 %v4337_v1 }
 0x5cb   :  { %4339 = vmatprep.subr.bf16.mxu1 %v4966_v27 }
 0x5d0   :  { %v4287_v14 = vpop.f32.mrb[172].mxu0 }
 0x5d1   :  { %v3480_v41 = vadd.f32 %v4287_v14, %v3813_v62  ;;  %v3471_v15 = vpop.f32.mrb[173].mxu0 }
 0x5d2   :  { %v3472_v38 = vadd.f32 %v3813_v62, %v3471_v15  ;;  %v4288_v5 = vpop.f32.mrb[174].mxu0  ;;  %4341 = vmatpush3.bf16.xpose.msra.mxu1 %v4340_v45 }
 0x5d3   :  { %v3483_v55 = vadd.f32 %v4288_v5, %v3813_v62  ;;  %v3474_v42 = vpop.f32.mrb[175].mxu0  ;;  %4342 = vmatprep.subr.bf16.mxu1 %v4966_v27  ;;  %v3500_v34 = vmax.f32 %v3480_v41, 0.0 }
 0x5d4   :  { %v3475_v63 = vadd.f32 %v3813_v62, %v3474_v42  ;;  %v3498_v46 = vmax.f32 %v3472_v38, 0.0 }
 0x5d5   :  { %v3501_v10 = vmax.f32 %v3483_v55, 0.0 }
 0x5d6   :  { %v3499_v47 = vmax.f32 %v3475_v63, 0.0 }
 0x5d7   :  { %v4346_v31 = vpack.c.bf16 %v3501_v10, %v3500_v34 }
 0x5d8   :  { %v4343_v8 = vpack.c.bf16 %v3499_v47, %v3498_v46 }
 0x5da   :  { %4344 = vmatpush3.bf16.xpose.msra.mxu1 %v4343_v8 }
 0x5db   :  { %4345 = vmatprep.subr.bf16.mxu1 %v4966_v27 }
 0x5e2   :  { %4347 = vmatpush3.bf16.xpose.msra.mxu1 %v4346_v31 }
 0x5e9   :  { %4322 = vmatmul.mubr.f32.vlgmr.msra.gmra.mrb[96].mxu1 %v3502_v60 }
 0x6bc   :  { %v3579_v49 = vpop.f32.mrb[96].mxu1 }
 0x6bd   :  { %v3580_v48 = vadd.f32 %v3579_v49, %v3512_v51  ;;  %v4323_v62 = vpop.f32.mrb[97].mxu1 }
 0x6bf   :  { %3583 = vst [vmem:[%s5650_s15] sm:$0x1] %v3580_v48 }
 0x6c0   :  { %3588 = vsyncpa [#allocation4], 1 }
 0x6c1   :  { %3589 = vsyncpa [#allocation6], 1 }
 0x6c2   :  { %3590 = vsyncpa [#allocation9], 1 }
 0x6c3   :  { %3591 = vsyncpa [#allocation12], 1 }

</bundles_post_ra>
